<compile_context>
chip_gen: v6e
topology: v6e:2x2x1
jax: 0.10.0
libtpu: 0.0.40
codegen_flags: <defaults>
</compile_context>

<pallas_src>
import math
import jax
import jax.numpy as jnp
from jax.experimental import pallas as pl
from jax.experimental.pallas import tpu as pltpu

# ----- synthetic cfg -----
LATENT_VECTOR_SIZE = 32      # cfg.LATENT_VECTOR_SIZE
NUM_HEADS = 4                # cfg.NUMBER_OF_TRANSFORMER_HEADS
EMBEDDING_DIM = 9
CENTER_NORMAL_AREA_DIM = 7
D_FF = 512
LN_EPS = 1e-5
TB_MAX = 128                 # batch-tile cap (VMEM-safe on v5e/v6e/v7x)


def mesh_encoder_kernel(x_ref,
                        pe1_w, pe1_b, pe2_w, pe2_b,
                        w_qkv, b_qkv, wo, bo,
                        ln1_g, ln1_b,
                        ff1_w, ff1_b, ff2_w, ff2_b,
                        ln2_g, ln2_b,
                        wz, bz,
                        z_ref, k_ref, v_ref, emb_ref):
    D, H = EMBEDDING_DIM, NUM_HEADS
    HD = H * D
    TB, N, F = x_ref.shape

    # Stack the batch tile onto the matmul M axis: (TB, N, F) -> (TB*N, F).
    x = x_ref[...].reshape(TB * N, F)
    normal = x[:, :D]                           # (TB*N, 9)
    pos_in = x[:, D:]                           # (TB*N, 7)

    # Positional-embedding MLP: Linear(7->L) + relu, Linear(L->9) + relu.
    h1 = jnp.maximum(
        jnp.dot(pos_in, pe1_w[...], preferred_element_type=jnp.float32) + pe1_b[...], 0.0)
    pos = jnp.maximum(
        jnp.dot(h1, pe2_w[...], preferred_element_type=jnp.float32) + pe2_b[...], 0.0)
    emb = normal + pos                          # (TB*N, 9)
    emb_ref[...] = emb.astype(emb_ref.dtype)

    # Fused Q|K|V projection: one (TB*N, 9) @ (9, 3*HD) matmul.
    qkv = jnp.dot(emb, w_qkv[...], preferred_element_type=jnp.float32) + b_qkv[...]
    q = qkv[:, :HD]
    k = qkv[:, HD:2 * HD]
    v = qkv[:, 2 * HD:]
    k_ref[...] = k.astype(k_ref.dtype)
    v_ref[...] = v.astype(v_ref.dtype)

    # Multi-head self-attention, batched over the TB batch tile (flash-style 3D einsums).
    q3 = q.reshape(TB, N, HD)
    k3 = k.reshape(TB, N, HD)
    v3 = v.reshape(TB, N, HD)
    scale = 1.0 / math.sqrt(D)
    heads = []
    for hh in range(H):                         # static loop over 4 heads
        lo = hh * D
        qh = q3[:, :, lo:lo + D]
        kh = k3[:, :, lo:lo + D]
        vh = v3[:, :, lo:lo + D]
        s = jnp.einsum('bnd,bmd->bnm', qh, kh,
                       preferred_element_type=jnp.float32) * scale       # (TB, N, N)
        s = s - jnp.max(s, axis=-1, keepdims=True)
        p = jnp.exp(s)
        p = p * pl.reciprocal(jnp.sum(p, axis=-1, keepdims=True), approx=True)
        heads.append(jnp.einsum('bnm,bmd->bnd', p, vh,
                                preferred_element_type=jnp.float32))     # (TB, N, 9)
    att = jnp.concatenate(heads, axis=-1).reshape(TB * N, HD)            # (TB*N, 36)
    att_out = jnp.dot(att, wo[...], preferred_element_type=jnp.float32) + bo[...]

    def layer_norm(t, g, b):
        mu = jnp.mean(t, axis=-1, keepdims=True)
        var = jnp.mean((t - mu) ** 2, axis=-1, keepdims=True)
        return (t - mu) * jax.lax.rsqrt(var + LN_EPS) * g + b

    y1 = layer_norm(emb + att_out, ln1_g[...], ln1_b[...])

    # Position-wise FFN (dominant FLOPs): bf16 MXU inputs, f32 accumulation.
    ff = jnp.dot(y1.astype(jnp.bfloat16), ff1_w[...].astype(jnp.bfloat16),
                 preferred_element_type=jnp.float32) + ff1_b[...]
    ff = jnp.maximum(ff, 0.0)
    ff = jnp.dot(ff.astype(jnp.bfloat16), ff2_w[...].astype(jnp.bfloat16),
                 preferred_element_type=jnp.float32) + ff2_b[...]
    y2 = layer_norm(y1 + ff, ln2_g[...], ln2_b[...])                     # (TB*N, 9)

    # Latent vector Z: mean-pool over faces, project to latent dim.
    pooled = jnp.mean(y2.reshape(TB, N, D), axis=1)                      # (TB, 9)
    z = jnp.dot(pooled, wz[...], preferred_element_type=jnp.float32) + bz[...]   # (TB, L)
    z_ref[...] = z[:, None, :].astype(z_ref.dtype)                       # (TB, 1, L)


def _linear(key, fan_in, fan_out):
    kw, kb = jax.random.split(key)
    bound = 1.0 / math.sqrt(fan_in)
    w = jax.random.uniform(kw, (fan_in, fan_out), jnp.float32, -bound, bound)
    b = jax.random.uniform(kb, (1, fan_out), jnp.float32, -bound, bound)
    return w, b


def init_params(key):
    D, L, FF = EMBEDDING_DIM, LATENT_VECTOR_SIZE, D_FF
    HD = NUM_HEADS * D
    keys = jax.random.split(key, 9)
    pe1_w, pe1_b = _linear(keys[0], CENTER_NORMAL_AREA_DIM, L)
    pe2_w, pe2_b = _linear(keys[1], L, D)
    wq, bq = _linear(keys[2], D, HD)
    wk, bk = _linear(keys[3], D, HD)
    wv, bv = _linear(keys[4], D, HD)
    w_qkv = jnp.concatenate([wq, wk, wv], axis=1)       # (9, 3*HD) fused projection
    b_qkv = jnp.concatenate([bq, bk, bv], axis=1)       # (1, 3*HD)
    wo, bo = _linear(keys[5], HD, D)
    ln1_g, ln1_b = jnp.ones((1, D), jnp.float32), jnp.zeros((1, D), jnp.float32)
    ff1_w, ff1_b = _linear(keys[6], D, FF)
    ff2_w, ff2_b = _linear(keys[7], FF, D)
    ln2_g, ln2_b = jnp.ones((1, D), jnp.float32), jnp.zeros((1, D), jnp.float32)
    wz, bz = _linear(keys[8], D, L)
    return [pe1_w, pe1_b, pe2_w, pe2_b, w_qkv, b_qkv, wo, bo,
            ln1_g, ln1_b, ff1_w, ff1_b, ff2_w, ff2_b, ln2_g, ln2_b, wz, bz]


def mesh_transformer_encoder(X, params, tb_max=TB_MAX):
    B, N, F = X.shape
    D, L, H = EMBEDDING_DIM, LATENT_VECTOR_SIZE, NUM_HEADS
    HD = H * D

    # Batch-tile size: big enough to amortize per-step overhead / fill MXU M,
    # but keep >=2 grid steps when B >= 2 (both v7x TensorCores) and stay VMEM-safe.
    tb = max(1, min(tb_max, -(-B // 2)))
    n_tiles = -(-B // tb)
    B_pad = n_tiles * tb
    if B_pad != B:
        X = jnp.concatenate([X, jnp.zeros((B_pad - B, N, F), X.dtype)], axis=0)

    x_spec = pl.BlockSpec((tb, N, F), lambda b: (b, 0, 0))
    w_specs = [pl.BlockSpec(p.shape, lambda b: (0, 0)) for p in params]

    # K/V/emb are produced as flat (B_pad*N, C) row-major arrays -> one contiguous DMA per tile;
    # reshaping back to (B, N, C) in the wrapper is a free bitcast.
    out_shape = (
        jax.ShapeDtypeStruct((B_pad, 1, L), jnp.float32),     # Z
        jax.ShapeDtypeStruct((B_pad * N, HD), jnp.float32),   # K (flattened rows)
        jax.ShapeDtypeStruct((B_pad * N, HD), jnp.float32),   # V (flattened rows)
        jax.ShapeDtypeStruct((B_pad * N, D), jnp.float32),    # embeddings (flattened rows)
    )
    out_specs = (
        pl.BlockSpec((tb, 1, L), lambda b: (b, 0, 0)),
        pl.BlockSpec((tb * N, HD), lambda b: (b, 0)),
        pl.BlockSpec((tb * N, HD), lambda b: (b, 0)),
        pl.BlockSpec((tb * N, D), lambda b: (b, 0)),
    )

    z3, k2, v2, emb2 = pl.pallas_call(
        mesh_encoder_kernel,
        out_shape=out_shape,
        grid=(n_tiles,),
        in_specs=[x_spec] + w_specs,
        out_specs=out_specs,
        compiler_params=pltpu.CompilerParams(
            dimension_semantics=("parallel",),
            vmem_limit_bytes=64 * 1024 * 1024),
    )(X, *params)

    Z = z3[:B, 0, :]
    K = k2.reshape(B_pad, N, HD)[:B]
    V = v2.reshape(B_pad, N, HD)[:B]
    emb = emb2.reshape(B_pad, N, D)[:B]
    return Z, K, V, emb


if __name__ == "__main__":
    key = jax.random.PRNGKey(0)
    kx, kp = jax.random.split(key)
    B, N = 2, 16
    X = jax.random.normal(
        kx, (B, N, EMBEDDING_DIM + CENTER_NORMAL_AREA_DIM), jnp.float32)
    params = init_params(kp)

    Z, K, V, emb = jax.jit(mesh_transformer_encoder)(X, params)
    jax.block_until_ready((Z, K, V, emb))

    assert Z.shape == (B, LATENT_VECTOR_SIZE)
    assert K.shape == (B, N, NUM_HEADS * EMBEDDING_DIM)
    assert V.shape == (B, N, NUM_HEADS * EMBEDDING_DIM)
    assert emb.shape == (B, N, EMBEDDING_DIM)
    assert bool(jnp.all(jnp.isfinite(Z)) & jnp.all(jnp.isfinite(K))
                & jnp.all(jnp.isfinite(V)) & jnp.all(jnp.isfinite(emb)))
    print("KERNEL_OK")
</pallas_src>

<mosaic_0001>
module attributes {stable_mosaic.version = 11 : i64} {
  func.func @mesh_encoder_kernel(%arg0: i32, %arg1: memref<1x16x16xf32, #tpu.memory_space<vmem>>, %arg2: memref<7x32xf32, #tpu.memory_space<vmem>>, %arg3: memref<1x32xf32, #tpu.memory_space<vmem>>, %arg4: memref<32x9xf32, #tpu.memory_space<vmem>>, %arg5: memref<1x9xf32, #tpu.memory_space<vmem>>, %arg6: memref<9x108xf32, #tpu.memory_space<vmem>>, %arg7: memref<1x108xf32, #tpu.memory_space<vmem>>, %arg8: memref<36x9xf32, #tpu.memory_space<vmem>>, %arg9: memref<1x9xf32, #tpu.memory_space<vmem>>, %arg10: memref<1x9xf32, #tpu.memory_space<vmem>>, %arg11: memref<1x9xf32, #tpu.memory_space<vmem>>, %arg12: memref<9x512xf32, #tpu.memory_space<vmem>>, %arg13: memref<1x512xf32, #tpu.memory_space<vmem>>, %arg14: memref<512x9xf32, #tpu.memory_space<vmem>>, %arg15: memref<1x9xf32, #tpu.memory_space<vmem>>, %arg16: memref<1x9xf32, #tpu.memory_space<vmem>>, %arg17: memref<1x9xf32, #tpu.memory_space<vmem>>, %arg18: memref<9x32xf32, #tpu.memory_space<vmem>>, %arg19: memref<1x32xf32, #tpu.memory_space<vmem>>, %arg20: memref<1x1x32xf32, #tpu.memory_space<vmem>>, %arg21: memref<16x36xf32, #tpu.memory_space<vmem>>, %arg22: memref<16x36xf32, #tpu.memory_space<vmem>>, %arg23: memref<16x9xf32, #tpu.memory_space<vmem>>) attributes {dimension_semantics = [#tpu.dimension_semantics<parallel>], iteration_bounds = array<i64: 2>, scalar_prefetch = 0 : i64, scratch_operands = 0 : i64, tpu.core_type = #tpu.core_type<tc>, window_params = [{transform_indices = @transform_0, window_bounds = array<i64: 1, 16, 16>}, {pipeline_mode = #tpu.pipeline_mode<synchronous>, transform_indices = @transform_1, window_bounds = array<i64: 7, 32>}, {pipeline_mode = #tpu.pipeline_mode<synchronous>, transform_indices = @transform_2, window_bounds = array<i64: 1, 32>}, {pipeline_mode = #tpu.pipeline_mode<synchronous>, transform_indices = @transform_3, window_bounds = array<i64: 32, 9>}, {pipeline_mode = #tpu.pipeline_mode<synchronous>, transform_indices = @transform_4, window_bounds = array<i64: 1, 9>}, {pipeline_mode = #tpu.pipeline_mode<synchronous>, transform_indices = @transform_5, window_bounds = array<i64: 9, 108>}, {pipeline_mode = #tpu.pipeline_mode<synchronous>, transform_indices = @transform_6, window_bounds = array<i64: 1, 108>}, {pipeline_mode = #tpu.pipeline_mode<synchronous>, transform_indices = @transform_7, window_bounds = array<i64: 36, 9>}, {pipeline_mode = #tpu.pipeline_mode<synchronous>, transform_indices = @transform_8, window_bounds = array<i64: 1, 9>}, {pipeline_mode = #tpu.pipeline_mode<synchronous>, transform_indices = @transform_9, window_bounds = array<i64: 1, 9>}, {pipeline_mode = #tpu.pipeline_mode<synchronous>, transform_indices = @transform_10, window_bounds = array<i64: 1, 9>}, {pipeline_mode = #tpu.pipeline_mode<synchronous>, transform_indices = @transform_11, window_bounds = array<i64: 9, 512>}, {pipeline_mode = #tpu.pipeline_mode<synchronous>, transform_indices = @transform_12, window_bounds = array<i64: 1, 512>}, {pipeline_mode = #tpu.pipeline_mode<synchronous>, transform_indices = @transform_13, window_bounds = array<i64: 512, 9>}, {pipeline_mode = #tpu.pipeline_mode<synchronous>, transform_indices = @transform_14, window_bounds = array<i64: 1, 9>}, {pipeline_mode = #tpu.pipeline_mode<synchronous>, transform_indices = @transform_15, window_bounds = array<i64: 1, 9>}, {pipeline_mode = #tpu.pipeline_mode<synchronous>, transform_indices = @transform_16, window_bounds = array<i64: 1, 9>}, {pipeline_mode = #tpu.pipeline_mode<synchronous>, transform_indices = @transform_17, window_bounds = array<i64: 9, 32>}, {pipeline_mode = #tpu.pipeline_mode<synchronous>, transform_indices = @transform_18, window_bounds = array<i64: 1, 32>}, {transform_indices = @transform_19, window_bounds = array<i64: 1, 1, 32>}, {transform_indices = @transform_20, window_bounds = array<i64: 16, 36>}, {transform_indices = @transform_21, window_bounds = array<i64: 16, 36>}, {transform_indices = @transform_22, window_bounds = array<i64: 16, 9>}]} {
    %c0 = arith.constant 0 : index
    %c0_0 = arith.constant 0 : index
    %c0_1 = arith.constant 0 : index
    %0 = vector.load %arg1[%c0, %c0_0, %c0_1] : memref<1x16x16xf32, #tpu.memory_space<vmem>>, vector<1x16x16xf32>
    %1 = vector.shape_cast %0 : vector<1x16x16xf32> to vector<16x16xf32>
    %2 = vector.extract_strided_slice %1 {offsets = [0, 0], sizes = [16, 9], strides = [1, 1]} : vector<16x16xf32> to vector<16x9xf32>
    %3 = vector.extract_strided_slice %1 {offsets = [0, 9], sizes = [16, 7], strides = [1, 1]} : vector<16x16xf32> to vector<16x7xf32>
    %c0_2 = arith.constant 0 : index
    %c0_3 = arith.constant 0 : index
    %4 = vector.load %arg2[%c0_2, %c0_3] : memref<7x32xf32, #tpu.memory_space<vmem>>, vector<7x32xf32>
    %cst = arith.constant dense<0.000000e+00> : vector<16x32xf32>
    %5 = tpu.matmul %3, %4, %cst {dimension_numbers = #tpu.dot_dimension_numbers<[1], [0], [0], [1], [0, 0, 1, 1], [], []>} : vector<16x7xf32>, vector<7x32xf32>, vector<16x32xf32> -> vector<16x32xf32>
    %c0_4 = arith.constant 0 : index
    %c0_5 = arith.constant 0 : index
    %6 = vector.load %arg3[%c0_4, %c0_5] : memref<1x32xf32, #tpu.memory_space<vmem>>, vector<1x32xf32>
    %7 = vector.broadcast %6 : vector<1x32xf32> to vector<16x32xf32>
    %8 = arith.addf %5, %7 : vector<16x32xf32>
    %cst_6 = arith.constant 0.000000e+00 : f32
    %9 = vector.broadcast %cst_6 : f32 to vector<16x32xf32>
    %10 = arith.maximumf %8, %9 : vector<16x32xf32>
    %c0_7 = arith.constant 0 : index
    %c0_8 = arith.constant 0 : index
    %11 = vector.load %arg4[%c0_7, %c0_8] : memref<32x9xf32, #tpu.memory_space<vmem>>, vector<32x9xf32>
    %cst_9 = arith.constant dense<0.000000e+00> : vector<16x9xf32>
    %12 = tpu.matmul %10, %11, %cst_9 {dimension_numbers = #tpu.dot_dimension_numbers<[1], [0], [0], [1], [0, 0, 1, 1], [], []>} : vector<16x32xf32>, vector<32x9xf32>, vector<16x9xf32> -> vector<16x9xf32>
    %c0_10 = arith.constant 0 : index
    %c0_11 = arith.constant 0 : index
    %13 = vector.load %arg5[%c0_10, %c0_11] : memref<1x9xf32, #tpu.memory_space<vmem>>, vector<1x9xf32>
    %14 = vector.broadcast %13 : vector<1x9xf32> to vector<16x9xf32>
    %15 = arith.addf %12, %14 : vector<16x9xf32>
    %cst_12 = arith.constant 0.000000e+00 : f32
    %16 = vector.broadcast %cst_12 : f32 to vector<16x9xf32>
    %17 = arith.maximumf %15, %16 : vector<16x9xf32>
    %18 = arith.addf %2, %17 : vector<16x9xf32>
    %c0_13 = arith.constant 0 : index
    %c0_14 = arith.constant 0 : index
    %19 = vector.load %arg23[%c0_13, %c0_14] : memref<16x9xf32, #tpu.memory_space<vmem>>, vector<16x9xf32>
    tpu.vector_store %arg23[%c0_13, %c0_14], %18 {strides = array<i32>} : memref<16x9xf32, #tpu.memory_space<vmem>>, vector<16x9xf32>,
    %c0_15 = arith.constant 0 : index
    %c0_16 = arith.constant 0 : index
    %20 = vector.load %arg6[%c0_15, %c0_16] : memref<9x108xf32, #tpu.memory_space<vmem>>, vector<9x108xf32>
    %cst_17 = arith.constant dense<0.000000e+00> : vector<16x108xf32>
    %21 = tpu.matmul %18, %20, %cst_17 {dimension_numbers = #tpu.dot_dimension_numbers<[1], [0], [0], [1], [0, 0, 1, 1], [], []>} : vector<16x9xf32>, vector<9x108xf32>, vector<16x108xf32> -> vector<16x108xf32>
    %c0_18 = arith.constant 0 : index
    %c0_19 = arith.constant 0 : index
    %22 = vector.load %arg7[%c0_18, %c0_19] : memref<1x108xf32, #tpu.memory_space<vmem>>, vector<1x108xf32>
    %23 = vector.broadcast %22 : vector<1x108xf32> to vector<16x108xf32>
    %24 = arith.addf %21, %23 : vector<16x108xf32>
    %25 = vector.extract_strided_slice %24 {offsets = [0, 0], sizes = [16, 36], strides = [1, 1]} : vector<16x108xf32> to vector<16x36xf32>
    %26 = vector.extract_strided_slice %24 {offsets = [0, 36], sizes = [16, 36], strides = [1, 1]} : vector<16x108xf32> to vector<16x36xf32>
    %27 = vector.extract_strided_slice %24 {offsets = [0, 72], sizes = [16, 36], strides = [1, 1]} : vector<16x108xf32> to vector<16x36xf32>
    %c0_20 = arith.constant 0 : index
    %c0_21 = arith.constant 0 : index
    %28 = vector.load %arg21[%c0_20, %c0_21] : memref<16x36xf32, #tpu.memory_space<vmem>>, vector<16x36xf32>
    tpu.vector_store %arg21[%c0_20, %c0_21], %26 {strides = array<i32>} : memref<16x36xf32, #tpu.memory_space<vmem>>, vector<16x36xf32>,
    %c0_22 = arith.constant 0 : index
    %c0_23 = arith.constant 0 : index
    %29 = vector.load %arg22[%c0_22, %c0_23] : memref<16x36xf32, #tpu.memory_space<vmem>>, vector<16x36xf32>
    tpu.vector_store %arg22[%c0_22, %c0_23], %27 {strides = array<i32>} : memref<16x36xf32, #tpu.memory_space<vmem>>, vector<16x36xf32>,
    %30 = vector.shape_cast %25 : vector<16x36xf32> to vector<1x16x36xf32>
    %31 = vector.shape_cast %26 : vector<16x36xf32> to vector<1x16x36xf32>
    %32 = vector.shape_cast %27 : vector<16x36xf32> to vector<1x16x36xf32>
    %33 = vector.extract_strided_slice %30 {offsets = [0, 0, 0], sizes = [1, 16, 9], strides = [1, 1, 1]} : vector<1x16x36xf32> to vector<1x16x9xf32>
    %34 = vector.extract_strided_slice %31 {offsets = [0, 0, 0], sizes = [1, 16, 9], strides = [1, 1, 1]} : vector<1x16x36xf32> to vector<1x16x9xf32>
    %35 = vector.extract_strided_slice %32 {offsets = [0, 0, 0], sizes = [1, 16, 9], strides = [1, 1, 1]} : vector<1x16x36xf32> to vector<1x16x9xf32>
    "tpu.trace_start"() <{level = 10 : i32, message = "bnd,bmd->bnm"}> : () -> ()
    %cst_24 = arith.constant dense<0.000000e+00> : vector<1x16x16xf32>
    %36 = tpu.matmul %33, %34, %cst_24 {dimension_numbers = #tpu.dot_dimension_numbers<[2], [2], [1], [1], [0, 0, 0, 1, 1, 1], [0], [0]>} : vector<1x16x9xf32>, vector<1x16x9xf32>, vector<1x16x16xf32> -> vector<1x16x16xf32>
    "tpu.trace_stop"() : () -> ()
    %cst_25 = arith.constant 0.333333343 : f32
    %37 = vector.broadcast %cst_25 : f32 to vector<1x16x16xf32>
    %38 = arith.mulf %36, %37 : vector<1x16x16xf32>
    %cst_26 = arith.constant dense<0xFF800000> : vector<1x16xf32>
    %39 = vector.multi_reduction <maximumf>, %38, %cst_26 [2] : vector<1x16x16xf32> to vector<1x16xf32>
    %40 = vector.shape_cast %39 : vector<1x16xf32> to vector<1x16x1xf32>
    %41 = vector.broadcast %40 : vector<1x16x1xf32> to vector<1x16x16xf32>
    %42 = arith.subf %38, %41 : vector<1x16x16xf32>
    %43 = math.exp %42 : vector<1x16x16xf32>
    %cst_27 = arith.constant dense<0.000000e+00> : vector<1x16xf32>
    %44 = vector.multi_reduction <add>, %43, %cst_27 [2] : vector<1x16x16xf32> to vector<1x16xf32>
    %45 = vector.shape_cast %44 : vector<1x16xf32> to vector<1x16x1xf32>
    %46 = tpu.reciprocal %45 {approx = true} : vector<1x16x1xf32> -> vector<1x16x1xf32>
    %47 = vector.broadcast %46 : vector<1x16x1xf32> to vector<1x16x16xf32>
    %48 = arith.mulf %43, %47 : vector<1x16x16xf32>
    "tpu.trace_start"() <{level = 10 : i32, message = "bnm,bmd->bnd"}> : () -> ()
    %cst_28 = arith.constant dense<0.000000e+00> : vector<1x16x9xf32>
    %49 = tpu.matmul %48, %35, %cst_28 {dimension_numbers = #tpu.dot_dimension_numbers<[2], [1], [1], [2], [0, 0, 0, 1, 1, 2], [0], [0]>} : vector<1x16x16xf32>, vector<1x16x9xf32>, vector<1x16x9xf32> -> vector<1x16x9xf32>
    "tpu.trace_stop"() : () -> ()
    %50 = vector.extract_strided_slice %30 {offsets = [0, 0, 9], sizes = [1, 16, 9], strides = [1, 1, 1]} : vector<1x16x36xf32> to vector<1x16x9xf32>
    %51 = vector.extract_strided_slice %31 {offsets = [0, 0, 9], sizes = [1, 16, 9], strides = [1, 1, 1]} : vector<1x16x36xf32> to vector<1x16x9xf32>
    %52 = vector.extract_strided_slice %32 {offsets = [0, 0, 9], sizes = [1, 16, 9], strides = [1, 1, 1]} : vector<1x16x36xf32> to vector<1x16x9xf32>
    "tpu.trace_start"() <{level = 10 : i32, message = "bnd,bmd->bnm"}> : () -> ()
    %cst_29 = arith.constant dense<0.000000e+00> : vector<1x16x16xf32>
    %53 = tpu.matmul %50, %51, %cst_29 {dimension_numbers = #tpu.dot_dimension_numbers<[2], [2], [1], [1], [0, 0, 0, 1, 1, 1], [0], [0]>} : vector<1x16x9xf32>, vector<1x16x9xf32>, vector<1x16x16xf32> -> vector<1x16x16xf32>
    "tpu.trace_stop"() : () -> ()
    %cst_30 = arith.constant 0.333333343 : f32
    %54 = vector.broadcast %cst_30 : f32 to vector<1x16x16xf32>
    %55 = arith.mulf %53, %54 : vector<1x16x16xf32>
    %cst_31 = arith.constant dense<0xFF800000> : vector<1x16xf32>
    %56 = vector.multi_reduction <maximumf>, %55, %cst_31 [2] : vector<1x16x16xf32> to vector<1x16xf32>
    %57 = vector.shape_cast %56 : vector<1x16xf32> to vector<1x16x1xf32>
    %58 = vector.broadcast %57 : vector<1x16x1xf32> to vector<1x16x16xf32>
    %59 = arith.subf %55, %58 : vector<1x16x16xf32>
    %60 = math.exp %59 : vector<1x16x16xf32>
    %cst_32 = arith.constant dense<0.000000e+00> : vector<1x16xf32>
    %61 = vector.multi_reduction <add>, %60, %cst_32 [2] : vector<1x16x16xf32> to vector<1x16xf32>
    %62 = vector.shape_cast %61 : vector<1x16xf32> to vector<1x16x1xf32>
    %63 = tpu.reciprocal %62 {approx = true} : vector<1x16x1xf32> -> vector<1x16x1xf32>
    %64 = vector.broadcast %63 : vector<1x16x1xf32> to vector<1x16x16xf32>
    %65 = arith.mulf %60, %64 : vector<1x16x16xf32>
    "tpu.trace_start"() <{level = 10 : i32, message = "bnm,bmd->bnd"}> : () -> ()
    %cst_33 = arith.constant dense<0.000000e+00> : vector<1x16x9xf32>
    %66 = tpu.matmul %65, %52, %cst_33 {dimension_numbers = #tpu.dot_dimension_numbers<[2], [1], [1], [2], [0, 0, 0, 1, 1, 2], [0], [0]>} : vector<1x16x16xf32>, vector<1x16x9xf32>, vector<1x16x9xf32> -> vector<1x16x9xf32>
    "tpu.trace_stop"() : () -> ()
    %67 = vector.extract_strided_slice %30 {offsets = [0, 0, 18], sizes = [1, 16, 9], strides = [1, 1, 1]} : vector<1x16x36xf32> to vector<1x16x9xf32>
    %68 = vector.extract_strided_slice %31 {offsets = [0, 0, 18], sizes = [1, 16, 9], strides = [1, 1, 1]} : vector<1x16x36xf32> to vector<1x16x9xf32>
    %69 = vector.extract_strided_slice %32 {offsets = [0, 0, 18], sizes = [1, 16, 9], strides = [1, 1, 1]} : vector<1x16x36xf32> to vector<1x16x9xf32>
    "tpu.trace_start"() <{level = 10 : i32, message = "bnd,bmd->bnm"}> : () -> ()
    %cst_34 = arith.constant dense<0.000000e+00> : vector<1x16x16xf32>
    %70 = tpu.matmul %67, %68, %cst_34 {dimension_numbers = #tpu.dot_dimension_numbers<[2], [2], [1], [1], [0, 0, 0, 1, 1, 1], [0], [0]>} : vector<1x16x9xf32>, vector<1x16x9xf32>, vector<1x16x16xf32> -> vector<1x16x16xf32>
    "tpu.trace_stop"() : () -> ()
    %cst_35 = arith.constant 0.333333343 : f32
    %71 = vector.broadcast %cst_35 : f32 to vector<1x16x16xf32>
    %72 = arith.mulf %70, %71 : vector<1x16x16xf32>
    %cst_36 = arith.constant dense<0xFF800000> : vector<1x16xf32>
    %73 = vector.multi_reduction <maximumf>, %72, %cst_36 [2] : vector<1x16x16xf32> to vector<1x16xf32>
    %74 = vector.shape_cast %73 : vector<1x16xf32> to vector<1x16x1xf32>
    %75 = vector.broadcast %74 : vector<1x16x1xf32> to vector<1x16x16xf32>
    %76 = arith.subf %72, %75 : vector<1x16x16xf32>
    %77 = math.exp %76 : vector<1x16x16xf32>
    %cst_37 = arith.constant dense<0.000000e+00> : vector<1x16xf32>
    %78 = vector.multi_reduction <add>, %77, %cst_37 [2] : vector<1x16x16xf32> to vector<1x16xf32>
    %79 = vector.shape_cast %78 : vector<1x16xf32> to vector<1x16x1xf32>
    %80 = tpu.reciprocal %79 {approx = true} : vector<1x16x1xf32> -> vector<1x16x1xf32>
    %81 = vector.broadcast %80 : vector<1x16x1xf32> to vector<1x16x16xf32>
    %82 = arith.mulf %77, %81 : vector<1x16x16xf32>
    "tpu.trace_start"() <{level = 10 : i32, message = "bnm,bmd->bnd"}> : () -> ()
    %cst_38 = arith.constant dense<0.000000e+00> : vector<1x16x9xf32>
    %83 = tpu.matmul %82, %69, %cst_38 {dimension_numbers = #tpu.dot_dimension_numbers<[2], [1], [1], [2], [0, 0, 0, 1, 1, 2], [0], [0]>} : vector<1x16x16xf32>, vector<1x16x9xf32>, vector<1x16x9xf32> -> vector<1x16x9xf32>
    "tpu.trace_stop"() : () -> ()
    %84 = vector.extract_strided_slice %30 {offsets = [0, 0, 27], sizes = [1, 16, 9], strides = [1, 1, 1]} : vector<1x16x36xf32> to vector<1x16x9xf32>
    %85 = vector.extract_strided_slice %31 {offsets = [0, 0, 27], sizes = [1, 16, 9], strides = [1, 1, 1]} : vector<1x16x36xf32> to vector<1x16x9xf32>
    %86 = vector.extract_strided_slice %32 {offsets = [0, 0, 27], sizes = [1, 16, 9], strides = [1, 1, 1]} : vector<1x16x36xf32> to vector<1x16x9xf32>
    "tpu.trace_start"() <{level = 10 : i32, message = "bnd,bmd->bnm"}> : () -> ()
    %cst_39 = arith.constant dense<0.000000e+00> : vector<1x16x16xf32>
    %87 = tpu.matmul %84, %85, %cst_39 {dimension_numbers = #tpu.dot_dimension_numbers<[2], [2], [1], [1], [0, 0, 0, 1, 1, 1], [0], [0]>} : vector<1x16x9xf32>, vector<1x16x9xf32>, vector<1x16x16xf32> -> vector<1x16x16xf32>
    "tpu.trace_stop"() : () -> ()
    %cst_40 = arith.constant 0.333333343 : f32
    %88 = vector.broadcast %cst_40 : f32 to vector<1x16x16xf32>
    %89 = arith.mulf %87, %88 : vector<1x16x16xf32>
    %cst_41 = arith.constant dense<0xFF800000> : vector<1x16xf32>
    %90 = vector.multi_reduction <maximumf>, %89, %cst_41 [2] : vector<1x16x16xf32> to vector<1x16xf32>
    %91 = vector.shape_cast %90 : vector<1x16xf32> to vector<1x16x1xf32>
    %92 = vector.broadcast %91 : vector<1x16x1xf32> to vector<1x16x16xf32>
    %93 = arith.subf %89, %92 : vector<1x16x16xf32>
    %94 = math.exp %93 : vector<1x16x16xf32>
    %cst_42 = arith.constant dense<0.000000e+00> : vector<1x16xf32>
    %95 = vector.multi_reduction <add>, %94, %cst_42 [2] : vector<1x16x16xf32> to vector<1x16xf32>
    %96 = vector.shape_cast %95 : vector<1x16xf32> to vector<1x16x1xf32>
    %97 = tpu.reciprocal %96 {approx = true} : vector<1x16x1xf32> -> vector<1x16x1xf32>
    %98 = vector.broadcast %97 : vector<1x16x1xf32> to vector<1x16x16xf32>
    %99 = arith.mulf %94, %98 : vector<1x16x16xf32>
    "tpu.trace_start"() <{level = 10 : i32, message = "bnm,bmd->bnd"}> : () -> ()
    %cst_43 = arith.constant dense<0.000000e+00> : vector<1x16x9xf32>
    %100 = tpu.matmul %99, %86, %cst_43 {dimension_numbers = #tpu.dot_dimension_numbers<[2], [1], [1], [2], [0, 0, 0, 1, 1, 2], [0], [0]>} : vector<1x16x16xf32>, vector<1x16x9xf32>, vector<1x16x9xf32> -> vector<1x16x9xf32>
    "tpu.trace_stop"() : () -> ()
    %101 = tpu.concatenate %49, %66, %83, %100 in 2 : vector<1x16x9xf32>, vector<1x16x9xf32>, vector<1x16x9xf32>, vector<1x16x9xf32> -> vector<1x16x36xf32>
    %102 = vector.shape_cast %101 : vector<1x16x36xf32> to vector<16x36xf32>
    %c0_44 = arith.constant 0 : index
    %c0_45 = arith.constant 0 : index
    %103 = vector.load %arg8[%c0_44, %c0_45] : memref<36x9xf32, #tpu.memory_space<vmem>>, vector<36x9xf32>
    %cst_46 = arith.constant dense<0.000000e+00> : vector<16x9xf32>
    %104 = tpu.matmul %102, %103, %cst_46 {dimension_numbers = #tpu.dot_dimension_numbers<[1], [0], [0], [1], [0, 0, 1, 1], [], []>} : vector<16x36xf32>, vector<36x9xf32>, vector<16x9xf32> -> vector<16x9xf32>
    %c0_47 = arith.constant 0 : index
    %c0_48 = arith.constant 0 : index
    %105 = vector.load %arg9[%c0_47, %c0_48] : memref<1x9xf32, #tpu.memory_space<vmem>>, vector<1x9xf32>
    %106 = vector.broadcast %105 : vector<1x9xf32> to vector<16x9xf32>
    %107 = arith.addf %104, %106 : vector<16x9xf32>
    %108 = arith.addf %18, %107 : vector<16x9xf32>
    %c0_49 = arith.constant 0 : index
    %c0_50 = arith.constant 0 : index
    %109 = vector.load %arg10[%c0_49, %c0_50] : memref<1x9xf32, #tpu.memory_space<vmem>>, vector<1x9xf32>
    %c0_51 = arith.constant 0 : index
    %c0_52 = arith.constant 0 : index
    %110 = vector.load %arg11[%c0_51, %c0_52] : memref<1x9xf32, #tpu.memory_space<vmem>>, vector<1x9xf32>
    %cst_53 = arith.constant dense<0.000000e+00> : vector<16xf32>
    %111 = vector.multi_reduction <add>, %108, %cst_53 [1] : vector<16x9xf32> to vector<16xf32>
    %112 = vector.shape_cast %111 : vector<16xf32> to vector<16x1xf32>
    %cst_54 = arith.constant 9.000000e+00 : f32
    %113 = vector.broadcast %cst_54 : f32 to vector<16x1xf32>
    %114 = arith.divf %112, %113 : vector<16x1xf32>
    %115 = vector.broadcast %114 : vector<16x1xf32> to vector<16x9xf32>
    %116 = arith.subf %108, %115 : vector<16x9xf32>
    %117 = arith.mulf %116, %116 : vector<16x9xf32>
    %cst_55 = arith.constant dense<0.000000e+00> : vector<16xf32>
    %118 = vector.multi_reduction <add>, %117, %cst_55 [1] : vector<16x9xf32> to vector<16xf32>
    %119 = vector.shape_cast %118 : vector<16xf32> to vector<16x1xf32>
    %cst_56 = arith.constant 9.000000e+00 : f32
    %120 = vector.broadcast %cst_56 : f32 to vector<16x1xf32>
    %121 = arith.divf %119, %120 : vector<16x1xf32>
    %122 = vector.broadcast %114 : vector<16x1xf32> to vector<16x9xf32>
    %123 = arith.subf %108, %122 : vector<16x9xf32>
    %cst_57 = arith.constant 9.99999974E-6 : f32
    %124 = vector.broadcast %cst_57 : f32 to vector<16x1xf32>
    %125 = arith.addf %121, %124 : vector<16x1xf32>
    %126 = math.rsqrt %125 : vector<16x1xf32>
    %127 = vector.broadcast %126 : vector<16x1xf32> to vector<16x9xf32>
    %128 = arith.mulf %123, %127 : vector<16x9xf32>
    %129 = vector.broadcast %109 : vector<1x9xf32> to vector<16x9xf32>
    %130 = arith.mulf %128, %129 : vector<16x9xf32>
    %131 = vector.broadcast %110 : vector<1x9xf32> to vector<16x9xf32>
    %132 = arith.addf %130, %131 : vector<16x9xf32>
    %133 = arith.truncf %132 : vector<16x9xf32> to vector<16x9xbf16>
    %c0_58 = arith.constant 0 : index
    %c0_59 = arith.constant 0 : index
    %134 = vector.load %arg12[%c0_58, %c0_59] : memref<9x512xf32, #tpu.memory_space<vmem>>, vector<9x512xf32>
    %135 = arith.truncf %134 : vector<9x512xf32> to vector<9x512xbf16>
    %cst_60 = arith.constant dense<0.000000e+00> : vector<16x512xf32>
    %136 = tpu.matmul %133, %135, %cst_60 {dimension_numbers = #tpu.dot_dimension_numbers<[1], [0], [0], [1], [0, 0, 1, 1], [], []>} : vector<16x9xbf16>, vector<9x512xbf16>, vector<16x512xf32> -> vector<16x512xf32>
    %c0_61 = arith.constant 0 : index
    %c0_62 = arith.constant 0 : index
    %137 = vector.load %arg13[%c0_61, %c0_62] : memref<1x512xf32, #tpu.memory_space<vmem>>, vector<1x512xf32>
    %138 = vector.broadcast %137 : vector<1x512xf32> to vector<16x512xf32>
    %139 = arith.addf %136, %138 : vector<16x512xf32>
    %cst_63 = arith.constant 0.000000e+00 : f32
    %140 = vector.broadcast %cst_63 : f32 to vector<16x512xf32>
    %141 = arith.maximumf %139, %140 : vector<16x512xf32>
    %142 = arith.truncf %141 : vector<16x512xf32> to vector<16x512xbf16>
    %c0_64 = arith.constant 0 : index
    %c0_65 = arith.constant 0 : index
    %143 = vector.load %arg14[%c0_64, %c0_65] : memref<512x9xf32, #tpu.memory_space<vmem>>, vector<512x9xf32>
    %144 = arith.truncf %143 : vector<512x9xf32> to vector<512x9xbf16>
    %cst_66 = arith.constant dense<0.000000e+00> : vector<16x9xf32>
    %145 = tpu.matmul %142, %144, %cst_66 {dimension_numbers = #tpu.dot_dimension_numbers<[1], [0], [0], [1], [0, 0, 1, 1], [], []>} : vector<16x512xbf16>, vector<512x9xbf16>, vector<16x9xf32> -> vector<16x9xf32>
    %c0_67 = arith.constant 0 : index
    %c0_68 = arith.constant 0 : index
    %146 = vector.load %arg15[%c0_67, %c0_68] : memref<1x9xf32, #tpu.memory_space<vmem>>, vector<1x9xf32>
    %147 = vector.broadcast %146 : vector<1x9xf32> to vector<16x9xf32>
    %148 = arith.addf %145, %147 : vector<16x9xf32>
    %149 = arith.addf %132, %148 : vector<16x9xf32>
    %c0_69 = arith.constant 0 : index
    %c0_70 = arith.constant 0 : index
    %150 = vector.load %arg16[%c0_69, %c0_70] : memref<1x9xf32, #tpu.memory_space<vmem>>, vector<1x9xf32>
    %c0_71 = arith.constant 0 : index
    %c0_72 = arith.constant 0 : index
    %151 = vector.load %arg17[%c0_71, %c0_72] : memref<1x9xf32, #tpu.memory_space<vmem>>, vector<1x9xf32>
    %cst_73 = arith.constant dense<0.000000e+00> : vector<16xf32>
    %152 = vector.multi_reduction <add>, %149, %cst_73 [1] : vector<16x9xf32> to vector<16xf32>
    %153 = vector.shape_cast %152 : vector<16xf32> to vector<16x1xf32>
    %cst_74 = arith.constant 9.000000e+00 : f32
    %154 = vector.broadcast %cst_74 : f32 to vector<16x1xf32>
    %155 = arith.divf %153, %154 : vector<16x1xf32>
    %156 = vector.broadcast %155 : vector<16x1xf32> to vector<16x9xf32>
    %157 = arith.subf %149, %156 : vector<16x9xf32>
    %158 = arith.mulf %157, %157 : vector<16x9xf32>
    %cst_75 = arith.constant dense<0.000000e+00> : vector<16xf32>
    %159 = vector.multi_reduction <add>, %158, %cst_75 [1] : vector<16x9xf32> to vector<16xf32>
    %160 = vector.shape_cast %159 : vector<16xf32> to vector<16x1xf32>
    %cst_76 = arith.constant 9.000000e+00 : f32
    %161 = vector.broadcast %cst_76 : f32 to vector<16x1xf32>
    %162 = arith.divf %160, %161 : vector<16x1xf32>
    %163 = vector.broadcast %155 : vector<16x1xf32> to vector<16x9xf32>
    %164 = arith.subf %149, %163 : vector<16x9xf32>
    %cst_77 = arith.constant 9.99999974E-6 : f32
    %165 = vector.broadcast %cst_77 : f32 to vector<16x1xf32>
    %166 = arith.addf %162, %165 : vector<16x1xf32>
    %167 = math.rsqrt %166 : vector<16x1xf32>
    %168 = vector.broadcast %167 : vector<16x1xf32> to vector<16x9xf32>
    %169 = arith.mulf %164, %168 : vector<16x9xf32>
    %170 = vector.broadcast %150 : vector<1x9xf32> to vector<16x9xf32>
    %171 = arith.mulf %169, %170 : vector<16x9xf32>
    %172 = vector.broadcast %151 : vector<1x9xf32> to vector<16x9xf32>
    %173 = arith.addf %171, %172 : vector<16x9xf32>
    %174 = vector.shape_cast %173 : vector<16x9xf32> to vector<1x16x9xf32>
    %cst_78 = arith.constant dense<0.000000e+00> : vector<1x9xf32>
    %175 = vector.multi_reduction <add>, %174, %cst_78 [1] : vector<1x16x9xf32> to vector<1x9xf32>
    %cst_79 = arith.constant 1.600000e+01 : f32
    %176 = vector.broadcast %cst_79 : f32 to vector<1x9xf32>
    %177 = arith.divf %175, %176 : vector<1x9xf32>
    %c0_80 = arith.constant 0 : index
    %c0_81 = arith.constant 0 : index
    %178 = vector.load %arg18[%c0_80, %c0_81] : memref<9x32xf32, #tpu.memory_space<vmem>>, vector<9x32xf32>
    %cst_82 = arith.constant dense<0.000000e+00> : vector<1x32xf32>
    %179 = tpu.matmul %177, %178, %cst_82 {dimension_numbers = #tpu.dot_dimension_numbers<[1], [0], [0], [1], [0, 0, 1, 1], [], []>} : vector<1x9xf32>, vector<9x32xf32>, vector<1x32xf32> -> vector<1x32xf32>
    %c0_83 = arith.constant 0 : index
    %c0_84 = arith.constant 0 : index
    %180 = vector.load %arg19[%c0_83, %c0_84] : memref<1x32xf32, #tpu.memory_space<vmem>>, vector<1x32xf32>
    %181 = arith.addf %179, %180 : vector<1x32xf32>
    %182 = vector.shape_cast %181 : vector<1x32xf32> to vector<1x1x32xf32>
    %c0_85 = arith.constant 0 : index
    %c0_86 = arith.constant 0 : index
    %c0_87 = arith.constant 0 : index
    %183 = vector.load %arg20[%c0_85, %c0_86, %c0_87] : memref<1x1x32xf32, #tpu.memory_space<vmem>>, vector<1x1x32xf32>
    tpu.vector_store %arg20[%c0_85, %c0_86, %c0_87], %182 {strides = array<i32>} : memref<1x1x32xf32, #tpu.memory_space<vmem>>, vector<1x1x32xf32>,
    return
  }
  func.func @transform_0(%arg0: i32) -> (i32, i32, i32) {
    %c0_i32 = arith.constant 0 : i32
    %c0_i32_0 = arith.constant 0 : i32
    %c0_i32_1 = arith.constant 0 : i32
    return %arg0, %c0_i32, %c0_i32_0 : i32, i32, i32
  }
  func.func @transform_1(%arg0: i32) -> (i32, i32) {
    %c0_i32 = arith.constant 0 : i32
    %c0_i32_0 = arith.constant 0 : i32
    %c0_i32_1 = arith.constant 0 : i32
    return %c0_i32, %c0_i32_0 : i32, i32
  }
  func.func @transform_2(%arg0: i32) -> (i32, i32) {
    %c0_i32 = arith.constant 0 : i32
    %c0_i32_0 = arith.constant 0 : i32
    %c0_i32_1 = arith.constant 0 : i32
    return %c0_i32, %c0_i32_0 : i32, i32
  }
  func.func @transform_3(%arg0: i32) -> (i32, i32) {
    %c0_i32 = arith.constant 0 : i32
    %c0_i32_0 = arith.constant 0 : i32
    %c0_i32_1 = arith.constant 0 : i32
    return %c0_i32, %c0_i32_0 : i32, i32
  }
  func.func @transform_4(%arg0: i32) -> (i32, i32) {
    %c0_i32 = arith.constant 0 : i32
    %c0_i32_0 = arith.constant 0 : i32
    %c0_i32_1 = arith.constant 0 : i32
    return %c0_i32, %c0_i32_0 : i32, i32
  }
  func.func @transform_5(%arg0: i32) -> (i32, i32) {
    %c0_i32 = arith.constant 0 : i32
    %c0_i32_0 = arith.constant 0 : i32
    %c0_i32_1 = arith.constant 0 : i32
    return %c0_i32, %c0_i32_0 : i32, i32
  }
  func.func @transform_6(%arg0: i32) -> (i32, i32) {
    %c0_i32 = arith.constant 0 : i32
    %c0_i32_0 = arith.constant 0 : i32
    %c0_i32_1 = arith.constant 0 : i32
    return %c0_i32, %c0_i32_0 : i32, i32
  }
  func.func @transform_7(%arg0: i32) -> (i32, i32) {
    %c0_i32 = arith.constant 0 : i32
    %c0_i32_0 = arith.constant 0 : i32
    %c0_i32_1 = arith.constant 0 : i32
    return %c0_i32, %c0_i32_0 : i32, i32
  }
  func.func @transform_8(%arg0: i32) -> (i32, i32) {
    %c0_i32 = arith.constant 0 : i32
    %c0_i32_0 = arith.constant 0 : i32
    %c0_i32_1 = arith.constant 0 : i32
    return %c0_i32, %c0_i32_0 : i32, i32
  }
  func.func @transform_9(%arg0: i32) -> (i32, i32) {
    %c0_i32 = arith.constant 0 : i32
    %c0_i32_0 = arith.constant 0 : i32
    %c0_i32_1 = arith.constant 0 : i32
    return %c0_i32, %c0_i32_0 : i32, i32
  }
  func.func @transform_10(%arg0: i32) -> (i32, i32) {
    %c0_i32 = arith.constant 0 : i32
    %c0_i32_0 = arith.constant 0 : i32
    %c0_i32_1 = arith.constant 0 : i32
    return %c0_i32, %c0_i32_0 : i32, i32
  }
  func.func @transform_11(%arg0: i32) -> (i32, i32) {
    %c0_i32 = arith.constant 0 : i32
    %c0_i32_0 = arith.constant 0 : i32
    %c0_i32_1 = arith.constant 0 : i32
    return %c0_i32, %c0_i32_0 : i32, i32
  }
  func.func @transform_12(%arg0: i32) -> (i32, i32) {
    %c0_i32 = arith.constant 0 : i32
    %c0_i32_0 = arith.constant 0 : i32
    %c0_i32_1 = arith.constant 0 : i32
    return %c0_i32, %c0_i32_0 : i32, i32
  }
  func.func @transform_13(%arg0: i32) -> (i32, i32) {
    %c0_i32 = arith.constant 0 : i32
    %c0_i32_0 = arith.constant 0 : i32
    %c0_i32_1 = arith.constant 0 : i32
    return %c0_i32, %c0_i32_0 : i32, i32
  }
  func.func @transform_14(%arg0: i32) -> (i32, i32) {
    %c0_i32 = arith.constant 0 : i32
    %c0_i32_0 = arith.constant 0 : i32
    %c0_i32_1 = arith.constant 0 : i32
    return %c0_i32, %c0_i32_0 : i32, i32
  }
  func.func @transform_15(%arg0: i32) -> (i32, i32) {
    %c0_i32 = arith.constant 0 : i32
    %c0_i32_0 = arith.constant 0 : i32
    %c0_i32_1 = arith.constant 0 : i32
    return %c0_i32, %c0_i32_0 : i32, i32
  }
  func.func @transform_16(%arg0: i32) -> (i32, i32) {
    %c0_i32 = arith.constant 0 : i32
    %c0_i32_0 = arith.constant 0 : i32
    %c0_i32_1 = arith.constant 0 : i32
    return %c0_i32, %c0_i32_0 : i32, i32
  }
  func.func @transform_17(%arg0: i32) -> (i32, i32) {
    %c0_i32 = arith.constant 0 : i32
    %c0_i32_0 = arith.constant 0 : i32
    %c0_i32_1 = arith.constant 0 : i32
    return %c0_i32, %c0_i32_0 : i32, i32
  }
  func.func @transform_18(%arg0: i32) -> (i32, i32) {
    %c0_i32 = arith.constant 0 : i32
    %c0_i32_0 = arith.constant 0 : i32
    %c0_i32_1 = arith.constant 0 : i32
    return %c0_i32, %c0_i32_0 : i32, i32
  }
  func.func @transform_19(%arg0: i32) -> (i32, i32, i32) {
    %c0_i32 = arith.constant 0 : i32
    %c0_i32_0 = arith.constant 0 : i32
    %c0_i32_1 = arith.constant 0 : i32
    return %arg0, %c0_i32, %c0_i32_0 : i32, i32, i32
  }
  func.func @transform_20(%arg0: i32) -> (i32, i32) {
    %c0_i32 = arith.constant 0 : i32
    %c0_i32_0 = arith.constant 0 : i32
    return %arg0, %c0_i32 : i32, i32
  }
  func.func @transform_21(%arg0: i32) -> (i32, i32) {
    %c0_i32 = arith.constant 0 : i32
    %c0_i32_0 = arith.constant 0 : i32
    return %arg0, %c0_i32 : i32, i32
  }
  func.func @transform_22(%arg0: i32) -> (i32, i32) {
    %c0_i32 = arith.constant 0 : i32
    %c0_i32_0 = arith.constant 0 : i32
    return %arg0, %c0_i32 : i32, i32
  }
}

</mosaic_0001>

<bundles_post_ra>
// kernel: mesh_transformer_encoder.1
= control target key start
LH: loop header
LB: loop body
LE: loop exit
PB: predicated region body
PF: predicated region fallthrough
CT: control target
= control target key end

     0   :  { %s3931_s0 = inlined_call_operand.vmem [shape: f32[2,16,16], index: 0, kind: input, shape index: {}]   ;;  %s3932_s1 = inlined_call_operand.vmem [shape: f32[7,32], index: 1, kind: input, shape index: {}]   ;;  %s3933_s2 = inlined_call_operand.vmem [shape: f32[1,32], index: 2, kind: input, shape index: {}]   ;;  %s3934_s3 = inlined_call_operand.vmem [shape: f32[32,9], index: 3, kind: input, shape index: {}]   ;;  %s3935_s4 = inlined_call_operand.vmem [shape: f32[1,9], index: 4, kind: input, shape index: {}]   ;;  %s3936_s5 = inlined_call_operand.vmem [shape: f32[9,108], index: 5, kind: input, shape index: {}]   ;;  %s3937_s6 = inlined_call_operand.vmem [shape: f32[1,108], index: 6, kind: input, shape index: {}]   ;;  %s3938_s7 = inlined_call_operand.vmem [shape: f32[36,9], index: 7, kind: input, shape index: {}]   ;;  %s3939_s8 = inlined_call_operand.vmem [shape: f32[1,9], index: 8, kind: input, shape index: {}]   ;;  %s3940_s9 = inlined_call_operand.vmem [shape: f32[1,9], index: 9, kind: input, shape index: {}]   ;;  %s3941_s10 = inlined_call_operand.vmem [shape: f32[1,9], index: 10, kind: input, shape index: {}]   ;;  %s3942_s11 = inlined_call_operand.vmem [shape: f32[9,512], index: 11, kind: input, shape index: {}]   ;;  %s3943_s12 = inlined_call_operand.vmem [shape: f32[1,512], index: 12, kind: input, shape index: {}]   ;;  %s3944_s13 = inlined_call_operand.vmem [shape: f32[512,9], index: 13, kind: input, shape index: {}]   ;;  %s3945_s14 = inlined_call_operand.vmem [shape: f32[1,9], index: 14, kind: input, shape index: {}]   ;;  %s3946_s15 = inlined_call_operand.vmem [shape: f32[1,9], index: 15, kind: input, shape index: {}]   ;;  %s3947_s16 = inlined_call_operand.vmem [shape: f32[1,9], index: 16, kind: input, shape index: {}]   ;;  %s3948_s17 = inlined_call_operand.vmem [shape: f32[9,32], index: 17, kind: input, shape index: {}]   ;;  %s3949_s18 = inlined_call_operand.vmem [shape: f32[1,32], index: 18, kind: input, shape index: {}]   ;;  %s3950_s19 = inlined_call_operand.hbm [shape: f32[2,1,32], index: 19, kind: output, shape index: {0}]   ;;  %s3951_s20 = inlined_call_operand.hbm [shape: f32[32,36], index: 20, kind: output, shape index: {1}]   ;;  %s3952_s21 = inlined_call_operand.hbm [shape: f32[32,36], index: 21, kind: output, shape index: {2}]   ;;  %s3953_s22 = inlined_call_operand.vmem [shape: f32[32,9], index: 22, kind: output, shape index: {3}]  }
   0x1   :  { %3968 = sst [smem:[#allocation14_spill]] %s3931_s0 }
   0x2   :  { %3969 = sst [smem:[#allocation15_spill]] %s3932_s1 }
   0x3   :  { %3970 = sst [smem:[#allocation16_spill]] %s3933_s2 }
   0x4   :  { %3971 = sst [smem:[#allocation17_spill]] %s3934_s3 }
   0x5   :  { %3972 = sst [smem:[#allocation18_spill]] %s3935_s4 }
   0x6   :  { %3973 = sst [smem:[#allocation19_spill]] %s3936_s5 }
   0x7   :  { %3974 = sst [smem:[#allocation20_spill]] %s3937_s6 }
   0x8   :  { %3975 = sst [smem:[#allocation21_spill]] %s3938_s7 }
   0x9   :  { %3976 = sst [smem:[#allocation22_spill]] %s3939_s8 }
   0xa   :  { %3977 = sst [smem:[#allocation23_spill]] %s3940_s9 }
   0xb   :  { %3978 = sst [smem:[#allocation24_spill]] %s3953_s22 }
   0xc   :  { %28 = vsyncpa [#allocation3], 0 }
   0xd   :  { %30 = vsyncpa [#allocation3 + $0x1], 0 }
   0xe   :  { %31 = vsyncpa [#allocation5], 0 }
   0xf   :  { %33 = vsyncpa [#allocation5 + $0x1], 0  ;;  %s3313_s3 = smov 0   ;;  %s3315_s28 = smov 0  }
  0x10   :  { %s3317_s29 = smov 0   ;;  %s3319_s30 = smov 0  }
  0x11 LB: > { %3979 = sst [smem:[#allocation9_spill]] %s3165_s28  ;;  %s3334_s4 = sadd.s32 4294967295, %s3173_s30   ;;  %s3173_s30 = sphi %s3319_s30, %s4002_s30   ;;  %s3169_s29 = sphi %s3317_s29, %s4005_s29   ;;  %s3165_s28 = sphi %s3315_s28, %s4004_s28   ;;  %s3161_s3 = sphi %s3313_s3, %s4003_s3  }
  0x12   : > { %3980 = sst [smem:[#allocation10_spill]] %s3169_s29  ;;  %s3956_s0 = sadd.s32 4294967294, %s3173_s30  }
  0x13   : > { %s3338_s23 = sadd.s32 1, %s3173_s30   ;;  %s450_s1 = sadd.s32 1, %s3169_s29 }
  0x14   : > { %3981 = sst [smem:[#allocation11_spill]] %s3338_s23  ;;  %s447_s5 = ssub.s32 %s3173_s30, %s3338_s23 }
  0x15   : > { %p460_p0 = scmp.ne.s32.totalorder %s3169_s29, %s3165_s28  ;;  %p448_p1 = scmp.eq.s32.totalorder %s447_s5, 0 }
  0x16   : > { %p461_p2 = scmp.eq.s32.totalorder %s3334_s4, 1  ;;  %p466_p3 = scmp.ne.s32.totalorder %s3165_s28, %s3161_s3 }
  0x17   : > { %p467_p4 = scmp.eq.s32.totalorder %s3956_s0, 1  ;;  %p2683_p7 = scmp.ge.s32.totalorder %s3173_s30, 1 }
  0x18   : > { %s3351_s24 = scalar_select %p448_p1, %s3169_s29, %s450_s1  }
  0x19   : > { %p3353_p5 = por %p461_p2, %p460_p0  ;;  %p3357_p6 = por %p467_p4, %p466_p3 }
  0x1a   : > { %3982 = sst [smem:[#allocation12_spill]] %s3351_s24  ;;  %p625_p8 = scmp.lt.s32.totalorder %s3173_s30, 3 }
  0x1b   : > { %s3984_s25 = scalar_select %p3357_p6, 1, 0 }
  0x1c   : > { %p626_p9 = pnand %p2683_p7, %p625_p8 }
  0x1d   : > { %3985 = sst [smem:[#allocation13_spill]] %s3984_s25  ;;  %p701_p10 = scmp.lt.s32.totalorder (!%p626_p9), %s3334_s4, 1 }
  0x1e   : > { %629 = sbr.rel (%p626_p9) target bundleno = 4722 (0x1272), region = 96  ;;  %s3986_s27 = sld [smem:[#allocation15_spill]] (!%p626_p9) }
  0x1f   : > { %s3987_s29 = sld [smem:[#allocation14_spill]] (!%p626_p9)  ;;  %s3961_s25 = smov (!%p626_p9), 119  }
  0x20   : > { %s3991_s2 = sld [smem:[#allocation18_spill]] (!%p626_p9)  ;;  %s3427_s26 = sand.u32 (!%p626_p9), 1, %s3165_s28  }
  0x21   : > { %s3992_s22 = sld [smem:[#allocation24_spill]] (!%p626_p9) }
  0x22   : > { %s3995_s7 = sld [smem:[#allocation21_spill]] (!%p626_p9) }
  0x23   : > { %vm736_vm0 = vcmask 1046528   ;;  %s702_s1 = scalar_select %p701_p10, %s3334_s4, 1  ;;  %vm731_vm1 = vcmask 56320   ;;  %vm828_vm2 = vcmask 261120   ;;  %vm932_vm3 = vcmask 1040384  }
  0x24   : > { %v717_v0 = vld [vmem:[%s3986_s27] sm:$0x7f]  ;;  %s3988_s27 = sld [smem:[#allocation17_spill]]  ;;  %vm914_vm4 = vcmask 72704   ;;  %vm1019_vm5 = vcmask 293888   ;;  %vm1115_vm6 = vcmask 130048  }
  0x25   : > { %2849 = vmatprep.subr.msk.mxu1 %vm736_vm0, %v717_v0  ;;  %s2747_s5 = sshll.u32 %s702_s1, 4  ;;  %s2688_s1 = sshll.u32 %s3334_s4, 1  ;;  %vm1875_vm7 = vcmask 1043456   ;;  %vm1851_vm8 = vcmask 146432   ;;  %vm1854_vm9 = vcmask 220160   ;;  %vm2039_vm10 = vcmask 1044480  }
  0x26   : > { %2850 = vmatpush3.msk.msra.mxu1 %vm736_vm0, %v717_v0  ;;  %s705_s23 = scalar_lea.vmem %s3987_s29, %s2747_s5  ;;  %p709_p11 = scmp.lt.s32.totalorder %s2688_s1, 3  ;;  %v2694_v18 = vld [vmem:[%s3991_s2] ss:$0 sm:$0xff]  ;;  %vm3192_vm11 = vmmov 0  }
  0x27   : > { %v715_v1 = vld [vmem:[%s705_s23] sm:$0xff]  ;;  %v716_v2 = vld [vmem:[%s705_s23 + $0x8] sm:$0xff]  ;;  %s3990_s23 = sld [smem:[#allocation19_spill]]  ;;  %s3176_s5 = smov 92  }
  0x28   : > { %727 = vrot.lane.b32.xlu0 %v715_v1, %s3961_s25  ;;  %s4007_s1 = smov (!%p709_p11, %s2688_s1), 3  ;;  %s2684_s2 = sshll.u32 %s3427_s26, 4 }
  0x29   : > { %s2689_s0 = sshll.u32 %s4007_s1, 3  ;;  %s3993_s1 = sld [smem:[#allocation20_spill]] }
  0x2a   : > { %v820_v5 = vld [vmem:[%s3988_s27 + $0x18] sm:$0xff]  ;;  %v819_v6 = vld [vmem:[%s3988_s27 + $0x10] sm:$0xff]  ;;  %v818_v7 = vld [vmem:[%s3988_s27 + $0x8] sm:$0xff]  ;;  %s3177_s29 = smov 56   ;;  %s3453_s24 = scalar_lea.vmem [#allocation6], %s2684_s2 }
  0x2b   : > { %2854 = vmatprep.subr.mxu1 %v820_v5  ;;  %v817_v8 = vld [vmem:[%s3988_s27] sm:$0xff]  ;;  %s3994_s27 = smov 119   ;;  %s3996_s8 = sld [smem:[#allocation22_spill]] }
  0x2c   : > { %729 = vrot.lane.b32.xlu0 %v716_v2, %s3961_s25  ;;  %s3989_s25 = sld [smem:[#allocation16_spill]]  ;;  %s2532_s28 = sshll.u32 %s3453_s24, 4  ;;  %s3858_s28 = int_to_ptr.vmem [resolvable:$true] %s2532_s28 }
  0x2d   : > { %v918_v16 = vld [vmem:[%s3990_s23 + $0x8] sm:$0x1]  ;;  %v917_v17 = vld [vmem:[%s3990_s23] sm:$0xff]  ;;  %s3997_s9 = sld [smem:[#allocation23_spill]]  ;;  %s2479_s23 = sand.u32 1, %s3334_s4  }
  0x2e   : > { %2865 = vmatprep.subr.msk.mxu0 %vm932_vm3, %v918_v16 }
  0x2f   : > { %2866 = vmatpush3.msk.msra.mxu0 %vm932_vm3, %v918_v16  ;;  %v2697_v27 = vld [vmem:[%s3993_s1] ss:$0 sm:$0xff]  ;;  %s3179_s1 = smov 47  }
  0x30   : > { %2867 = vmatprep.subr.mxu0 %v917_v17 }
  0x31   : > { %2868 = vmatpush3.msra.mxu0 %v917_v17 }
  0x32   : > { %v2690_v9 = vld [vmem:[%s3989_s25] ss:$0 sm:$0xff]  ;;  %s712_s25 = scalar_lea.vmem %s3992_s22, %s2689_s0  ;;  %s3432_s0 = scalar_lea.vmem [#allocation4], %s2684_s2 }
  0x33   : > { %s3181_s2 = smov 110   ;;  %s3966_s22 = sshll.u32 %s3334_s4, 8 }
  0x9a   : > { %v728_v3 = vpop.permute.xlu0 %727 }
  0x9b   : > { %2851 = vmatprep.mubr.msk.f32.mxu1 %vm731_vm1, %v728_v3 }
  0x9e   : > { %v730_v4 = vpop.permute.xlu0 %729 }
  0x9f   : > { %2852 = vmatmul.mubr.msk.f32.vlgmr.msra.gmra.mxu1 %vm731_vm1, %v730_v4 }
  0xa0   : > { %2855 = vmatpush3.msra.mxu1 %v820_v5 }
  0xa1   : > { %2856 = vmatprep.subr.mxu1 %v819_v6 }
  0xa2   : > { %2857 = vmatpush3.msra.mxu1 %v819_v6 }
  0xa3   : > { %2858 = vmatprep.subr.mxu1 %v818_v7 }
  0xa4   : > { %2859 = vmatpush3.msra.mxu1 %v818_v7 }
  0xa5   : > { %2860 = vmatprep.subr.mxu1 %v817_v8 }
  0xa6   : > { %2861 = vmatpush3.msra.mxu1 %v817_v8 }
 0x15f   : > { %v2853_v10 = vpop.f32.mrf.mxu1 }
 0x160   : > { %v812_v11 = vadd.f32 %v2853_v10, %v2690_v9 }
 0x161   : > { %v806_v12 = vpop.f32.mrf.mxu1 }
 0x162   : > { %v807_v13 = vadd.f32 %v2690_v9, %v806_v12  ;;  %v816_v15 = vmax.f32 %v812_v11, 0.0 }
 0x164   : > { %v815_v14 = vmax.f32 %v807_v13, 0.0 }
 0x166   : > { %2862 = vmatprep.mubr.msk.f32.mxu1 %vm828_vm2, %v815_v14 }
 0x167   : > { %2863 = vmatmul.mubr.msk.f32.vlgmr.msra.gmra.mxu1 %vm828_vm2, %v816_v15 }
 0x227   : > { %v2864_v19 = vpop.f32.mrf.mxu1 }
 0x228   : > { %v907_v20 = vadd.f32 %v2864_v19, %v2694_v18 }
 0x229   : > { %v901_v21 = vpop.f32.mrf.mxu1 }
 0x22a   : > { %v902_v22 = vadd.f32 %v2694_v18, %v901_v21  ;;  %v911_v23 = vmax.f32 %v907_v20, 0.0 }
 0x22c   : > { %v910_v24 = vmax.f32 %v902_v22, 0.0  ;;  %v3405_v26 = vadd.f32 %v911_v23, %v716_v2 }
 0x22e   : > { %v3403_v25 = vadd.f32 %v910_v24, %v715_v1  ;;  %916 = vst.msk [vmem:[%s712_s25 + $0x8] sm:$0xff] %vm914_vm4, %v3405_v26 }
 0x230   : > { %915 = vst.msk [vmem:[%s712_s25] sm:$0xff] %vm914_vm4, %v3403_v25  ;;  %2869 = vmatprep.mubr.msk.f32.mxu0 %vm914_vm4, %v3403_v25  ;;  %s3178_s25 = smov 83  }
 0x231   : > { %2870 = vmatmul.mubr.msk.f32.vlgmr.msra.gmra.mxu0 %vm914_vm4, %v3405_v26 }
 0x2f1   : > { %v2871_v28 = vpop.f32.mrf.mxu0 }
 0x2f2   : > { %v3418_v29 = vadd.f32 %v2871_v28, %v2697_v27 }
 0x2f3   : > { %v1002_v30 = vpop.f32.mrf.mxu0 }
 0x2f4   : > { %v3420_v31 = vadd.f32 %v2697_v27, %v1002_v30  ;;  %1015 = vrot.lane.b32.xlu1 %v3418_v29, %s3176_s5 }
 0x2f6   : > { %2876 = vmatprep.mubr.msk.f32.mxu0 %vm914_vm4, %v3420_v31 }
 0x2f8   : > { %1013 = vrot.lane.b32.xlu1 %v3420_v31, %s3176_s5  ;;  %s3180_s5 = smov 74  }
 0x366   : > { %v1016_v32 = vpop.permute.xlu1 %1015 }
 0x367   : > { %1021 = vst.msk [vmem:[%s3432_s0 + $0x8] sm:$0xff] %vm1019_vm5, %v1016_v32  ;;  %2872 = vmatprep.subr.msk.mxu0 %vm914_vm4, %v1016_v32 }
 0x368   : > { %2873 = vmatpush3.xpose.msk.msra.mxu0 %vm914_vm4, %v1016_v32 }
 0x36a   : > { %v1014_v33 = vpop.permute.xlu1 %1013 }
 0x36b   : > { %1020 = vst.msk [vmem:[%s3432_s0] sm:$0xff] %vm1019_vm5, %v1014_v33  ;;  %2874 = vmatprep.subr.msk.mxu0 %vm914_vm4, %v1014_v33 }
 0x36c   : > { %2875 = vmatpush3.xpose.msk.msra.mxu0 %vm914_vm4, %v1014_v33 }
 0x36f   : > { %2877 = vmatmul.mubr.msk.f32.vlgmr.msra.gmra.mxu0 %vm914_vm4, %v3418_v29 }
 0x42f   : > { %v2878_v34 = vpop.f32.mrf.mxu0 }
 0x430   : > { %v1114_v35 = vmul.f32 0.33333334, %v2878_v34 }
 0x431   : > { %v1104_v36 = vpop.f32.mrf.mxu0 }
 0x432   : > { %v1113_v37 = vmul.f32 0.33333334, %v1104_v36  ;;  %v1119_v38 = vsel %vm1115_vm6, %v1114_v35, -inf }
 0x433   : > { %1120 = vmax.xlane.f32.xlu1 %v1119_v38 }
 0x434   : > { %v1116_v39 = vsel %vm1115_vm6, %v1113_v37, -inf }
 0x435   : > { %1117 = vmax.xlane.f32.xlu0 %v1116_v39 }
 0x444   : > { %1024 = vrot.lane.b32.xlu1 %v3418_v29, %s3177_s29 }
 0x448   : > { %1225 = vrot.lane.b32.xlu1 %v3418_v29, %s3178_s25 }
 0x44c   : > { %1223 = vrot.lane.b32.xlu1 %v3420_v31, %s3178_s25  ;;  %s3183_s25 = smov 65  }
 0x450   : > { %1221 = vrot.lane.b32.xlu1 %v3418_v29, %s3994_s27 }
 0x4bc   : > { %v1121_v40 = vpop.xlane.xlu1 %1120 }
 0x4bd   : > { %v1123_v41 = vsub.f32 %v1114_v35, %v1121_v40 }
 0x4be   : > { %v1118_v42 = vpop.xlane.xlu0 %1117 }
 0x4bf   : > { %v1126_v43 = vmul.f32 1.442695, %v1123_v41  ;;  %v1122_v44 = vsub.f32 %v1113_v37, %v1118_v42 }
 0x4c0   : > { %v1025_v45 = vpop.permute.xlu1 %1024 }
 0x4c1   : > { %3017 = vpow2.f32 %v1126_v43  ;;  %v1124_v46 = vmul.f32 1.442695, %v1122_v44  ;;  %1029 = vst.msk [vmem:[%s3453_s24 + $0x8] sm:$0xff] %vm1019_vm5, %v1025_v45  ;;  %2879 = vmatprep.subr.mxu1 %v1025_v45 }
 0x4c2   : > { %2880 = vmatpush3.msra.mxu1 %v1025_v45 }
 0x4c3   : > { %3019 = vpow2.f32 %v1124_v46 }
 0x4c4   : > { %v1226_v54 = vpop.permute.xlu1 %1225 }
 0x4c8   : > { %v1224_v60 = vpop.permute.xlu1 %1223 }
 0x4cc   : > { %v1222_v61 = vpop.permute.xlu1 %1221 }
 0x4ce   : > { %v3018_v47 = vpop.eup %3017 }
 0x4cf   : > { %v1131_v48 = vsel %vm1115_vm6, %v3018_v47, 0.0 }
 0x4d0   : > { %v3020_v49 = vpop.eup %3019  ;;  %1132 = vadd.xlane.f32.xlu0 %v1131_v48 }
 0x4d1   : > { %v1128_v50 = vsel %vm1115_vm6, %v3020_v49, 0.0 }
 0x4d4   : > { %1129 = vadd.xlane.f32.xlu0 %v1128_v50 }
 0x4ea   : > { %1022 = vrot.lane.b32.xlu0 %v3420_v31, %s3177_s29  ;;  %s3182_s29 = smov 38  }
 0x4ee   : > { %1219 = vrot.lane.b32.xlu0 %v3420_v31, %s3994_s27  ;;  %s3184_s27 = smov 101  }
 0x559   : > { %v1133_v51 = vpop.xlane.xlu0 %1132 }
 0x55a   : > { %3021 = vrcp.f32 %v1133_v51 }
 0x55d   : > { %v1130_v52 = vpop.xlane.xlu0 %1129 }
 0x55e   : > { %3023 = vrcp.f32 %v1130_v52 }
 0x561   : > { %v1023_v53 = vpop.permute.xlu0 %1022 }
 0x562   : > { %1028 = vst.msk [vmem:[%s3453_s24] sm:$0xff] %vm1019_vm5, %v1023_v53  ;;  %2881 = vmatprep.subr.mxu1 %v1023_v53 }
 0x563   : > { %2882 = vmatpush3.msra.mxu1 %v1023_v53 }
 0x564   : > { %2886 = vmatprep.subr.msk.mxu1 %vm914_vm4, %v1226_v54 }
 0x565   : > { %v1220_v59 = vpop.permute.xlu0 %1219 }
 0x567   : > { %v3022_v55 = vpop.eup %3021 }
 0x568   : > { %v1137_v58 = vmul.f32 %v3022_v55, %v3018_v47 }
 0x56b   : > { %v3024_v56 = vpop.eup %3023 }
 0x56c   : > { %v1136_v57 = vmul.f32 %v3024_v56, %v3020_v49 }
 0x56e   : > { %2883 = vmatprep.mubr.msk.f32.mxu1 %vm1115_vm6, %v1136_v57 }
 0x56f   : > { %2884 = vmatmul.mubr.msk.f32.vlgmr.msra.gmra.mxu1 %vm1115_vm6, %v1137_v58 }
 0x570   : > { %2887 = vmatpush3.xpose.msk.msra.mxu1 %vm914_vm4, %v1226_v54  ;;  %2890 = vmatprep.mubr.msk.f32.mxu1 %vm914_vm4, %v1220_v59 }
 0x571   : > { %2888 = vmatprep.subr.msk.mxu1 %vm914_vm4, %v1224_v60 }
 0x574   : > { %2889 = vmatpush3.xpose.msk.msra.mxu1 %vm914_vm4, %v1224_v60 }
 0x577   : > { %2891 = vmatmul.mubr.msk.f32.vlgmr.msra.gmra.mxu1 %vm914_vm4, %v1222_v61 }
 0x62f   : > { %v3472_v62 = vpop.f32.mrf.mxu1 }
 0x631   : > { %v3474_v63 = vpop.f32.mrf.mxu1 }
 0x637   : > { %v2892_v0 = vpop.f32.mrf.mxu1 }
 0x638   : > { %v1311_v1 = vmul.f32 0.33333334, %v2892_v0 }
 0x639   : > { %v1301_v2 = vpop.f32.mrf.mxu1 }
 0x63a   : > { %v1310_v3 = vmul.f32 0.33333334, %v1301_v2  ;;  %v1315_v4 = vsel %vm1115_vm6, %v1311_v1, -inf }
 0x63b   : > { %1316 = vmax.xlane.f32.xlu1 %v1315_v4 }
 0x63c   : > { %v1312_v5 = vsel %vm1115_vm6, %v1310_v3, -inf }
 0x63d   : > { %1313 = vmax.xlane.f32.xlu0 %v1312_v5 }
 0x64c   : > { %1336 = vrot.lane.b32.xlu1 %v3418_v29, %s3179_s1 }
 0x650   : > { %1427 = vrot.lane.b32.xlu1 %v3418_v29, %s3180_s5 }
 0x654   : > { %1425 = vrot.lane.b32.xlu1 %v3420_v31, %s3180_s5  ;;  %s3186_s5 = smov 9  }
 0x658   : > { %1423 = vrot.lane.b32.xlu1 %v3418_v29, %s3181_s2 }
 0x6c4   : > { %v1317_v6 = vpop.xlane.xlu1 %1316 }
 0x6c5   : > { %v1319_v7 = vsub.f32 %v1311_v1, %v1317_v6 }
 0x6c6   : > { %v1314_v8 = vpop.xlane.xlu0 %1313 }
 0x6c7   : > { %v1322_v9 = vmul.f32 1.442695, %v1319_v7  ;;  %v1318_v10 = vsub.f32 %v1310_v3, %v1314_v8 }
 0x6c8   : > { %v1337_v11 = vpop.permute.xlu1 %1336 }
 0x6c9   : > { %3025 = vpow2.f32 %v1322_v9  ;;  %v1320_v12 = vmul.f32 1.442695, %v1318_v10  ;;  %2893 = vmatprep.subr.mxu0 %v1337_v11 }
 0x6ca   : > { %2894 = vmatpush3.msra.mxu0 %v1337_v11 }
 0x6cb   : > { %3027 = vpow2.f32 %v1320_v12 }
 0x6cc   : > { %v1428_v20 = vpop.permute.xlu1 %1427 }
 0x6d0   : > { %v1426_v28 = vpop.permute.xlu1 %1425 }
 0x6d4   : > { %v1424_v30 = vpop.permute.xlu1 %1423 }
 0x6d6   : > { %v3026_v13 = vpop.eup %3025 }
 0x6d7   : > { %v1327_v14 = vsel %vm1115_vm6, %v3026_v13, 0.0 }
 0x6d8   : > { %v3028_v15 = vpop.eup %3027  ;;  %1328 = vadd.xlane.f32.xlu0 %v1327_v14 }
 0x6d9   : > { %v1324_v16 = vsel %vm1115_vm6, %v3028_v15, 0.0 }
 0x6dc   : > { %1325 = vadd.xlane.f32.xlu0 %v1324_v16 }
 0x6f2   : > { %1334 = vrot.lane.b32.xlu0 %v3420_v31, %s3179_s1  ;;  %s3185_s1 = smov 29  }
 0x6f6   : > { %1421 = vrot.lane.b32.xlu0 %v3420_v31, %s3181_s2  ;;  %s3187_s2 = smov 18  }
 0x761   : > { %v1329_v17 = vpop.xlane.xlu0 %1328 }
 0x762   : > { %3029 = vrcp.f32 %v1329_v17 }
 0x765   : > { %v1326_v18 = vpop.xlane.xlu0 %1325 }
 0x766   : > { %3031 = vrcp.f32 %v1326_v18 }
 0x769   : > { %v1335_v19 = vpop.permute.xlu0 %1334 }
 0x76a   : > { %2895 = vmatprep.subr.mxu0 %v1335_v19 }
 0x76b   : > { %2896 = vmatpush3.msra.mxu0 %v1335_v19 }
 0x76c   : > { %2900 = vmatprep.subr.msk.mxu0 %vm914_vm4, %v1428_v20 }
 0x76d   : > { %v1422_v27 = vpop.permute.xlu0 %1421 }
 0x76f   : > { %v3030_v21 = vpop.eup %3029 }
 0x770   : > { %v1333_v24 = vmul.f32 %v3030_v21, %v3026_v13 }
 0x773   : > { %v3032_v22 = vpop.eup %3031 }
 0x774   : > { %v1332_v23 = vmul.f32 %v3032_v22, %v3028_v15 }
 0x776   : > { %2897 = vmatprep.mubr.msk.f32.mxu0 %vm1115_vm6, %v1332_v23 }
 0x777   : > { %2898 = vmatmul.mubr.msk.f32.vlgmr.msra.gmra.mxu0 %vm1115_vm6, %v1333_v24 }
 0x778   : > { %2901 = vmatpush3.xpose.msk.msra.mxu0 %vm914_vm4, %v1428_v20  ;;  %2904 = vmatprep.mubr.msk.f32.mxu0 %vm914_vm4, %v1422_v27  ;;  %v1860_v27 = vld [vmem:[%s3995_s7 + $0x18] sm:$0xff] }
 0x779   : > { %2902 = vmatprep.subr.msk.mxu0 %vm914_vm4, %v1426_v28 }
 0x77c   : > { %2903 = vmatpush3.xpose.msk.msra.mxu0 %vm914_vm4, %v1426_v28  ;;  %v1859_v28 = vld [vmem:[%s3995_s7 + $0x10] sm:$0xff] }
 0x77f   : > { %2905 = vmatmul.mubr.msk.f32.vlgmr.msra.gmra.mxu0 %vm914_vm4, %v1424_v30  ;;  %v1858_v30 = vld [vmem:[%s3995_s7 + $0x8] sm:$0xff] }
 0x837   : > { %v3494_v32 = vpop.f32.mrf.mxu0 }
 0x839   : > { %v3496_v33 = vpop.f32.mrf.mxu0 }
 0x83f   : > { %v2906_v34 = vpop.f32.mrf.mxu0 }
 0x840   : > { %v1513_v35 = vmul.f32 0.33333334, %v2906_v34 }
 0x841   : > { %v1503_v36 = vpop.f32.mrf.mxu0 }
 0x842   : > { %v1512_v37 = vmul.f32 0.33333334, %v1503_v36  ;;  %v1517_v38 = vsel %vm1115_vm6, %v1513_v35, -inf }
 0x843   : > { %1518 = vmax.xlane.f32.xlu1 %v1517_v38 }
 0x844   : > { %v1514_v39 = vsel %vm1115_vm6, %v1512_v37, -inf }
 0x845   : > { %1515 = vmax.xlane.f32.xlu0 %v1514_v39 }
 0x854   : > { %1538 = vrot.lane.b32.xlu1 %v3418_v29, %s3182_s29 }
 0x858   : > { %1629 = vrot.lane.b32.xlu1 %v3418_v29, %s3183_s25 }
 0x85c   : > { %1627 = vrot.lane.b32.xlu1 %v3420_v31, %s3183_s25  ;;  %s3830_s25 = scalar_lea.sflag [#allocation5], %s2479_s23 }
 0x860   : > { %1625 = vrot.lane.b32.xlu1 %v3418_v29, %s3184_s27 }
 0x8cc   : > { %v1519_v40 = vpop.xlane.xlu1 %1518 }
 0x8cd   : > { %v1521_v41 = vsub.f32 %v1513_v35, %v1519_v40 }
 0x8ce   : > { %v1516_v42 = vpop.xlane.xlu0 %1515 }
 0x8cf   : > { %v1524_v43 = vmul.f32 1.442695, %v1521_v41  ;;  %v1520_v44 = vsub.f32 %v1512_v37, %v1516_v42 }
 0x8d0   : > { %v1539_v45 = vpop.permute.xlu1 %1538 }
 0x8d1   : > { %3033 = vpow2.f32 %v1524_v43  ;;  %v1522_v46 = vmul.f32 1.442695, %v1520_v44  ;;  %2907 = vmatprep.subr.mxu1 %v1539_v45 }
 0x8d2   : > { %2908 = vmatpush3.msra.mxu1 %v1539_v45 }
 0x8d3   : > { %3035 = vpow2.f32 %v1522_v46 }
 0x8d4   : > { %v1630_v54 = vpop.permute.xlu1 %1629 }
 0x8d8   : > { %v1628_v60 = vpop.permute.xlu1 %1627 }
 0x8dc   : > { %v1626_v61 = vpop.permute.xlu1 %1625 }
 0x8de   : > { %v3034_v47 = vpop.eup %3033 }
 0x8df   : > { %v1529_v48 = vsel %vm1115_vm6, %v3034_v47, 0.0 }
 0x8e0   : > { %v3036_v49 = vpop.eup %3035  ;;  %1530 = vadd.xlane.f32.xlu0 %v1529_v48 }
 0x8e1   : > { %v1526_v50 = vsel %vm1115_vm6, %v3036_v49, 0.0 }
 0x8e4   : > { %1527 = vadd.xlane.f32.xlu0 %v1526_v50 }
 0x8fa   : > { %1536 = vrot.lane.b32.xlu0 %v3420_v31, %s3182_s29  ;;  %s3828_s29 = scalar_lea.hbm %s3951_s20, %s3966_s22 }
 0x8fe   : > { %1623 = vrot.lane.b32.xlu0 %v3420_v31, %s3184_s27 }
 0x969   : > { %v1531_v51 = vpop.xlane.xlu0 %1530 }
 0x96a   : > { %3037 = vrcp.f32 %v1531_v51 }
 0x96d   : > { %v1528_v52 = vpop.xlane.xlu0 %1527 }
 0x96e   : > { %3039 = vrcp.f32 %v1528_v52 }
 0x971   : > { %v1537_v53 = vpop.permute.xlu0 %1536 }
 0x972   : > { %2909 = vmatprep.subr.mxu1 %v1537_v53 }
 0x973   : > { %2910 = vmatpush3.msra.mxu1 %v1537_v53 }
 0x974   : > { %2914 = vmatprep.subr.msk.mxu1 %vm914_vm4, %v1630_v54 }
 0x975   : > { %v1624_v59 = vpop.permute.xlu0 %1623 }
 0x977   : > { %v3038_v55 = vpop.eup %3037 }
 0x978   : > { %v1535_v58 = vmul.f32 %v3038_v55, %v3034_v47  ;;  %v2725_v47 = vld [vmem:[%s3996_s8] ss:$0 sm:$0xff]  ;;  %s2516_s8 = sshll.u32 %s3432_s0, 4  ;;  %s3193_s0 = smov [#allocation4]   ;;  %s3818_s8 = int_to_ptr.vmem [resolvable:$true] %s2516_s8 }
 0x979   : > { %s3061_s27 = sshll.u32 %s3193_s0, 4  ;;  %s3062_s27 = int_to_ptr.vmem [resolvable:$false] %s3061_s27 }
 0x97a   : > { %p3064_p1 = scmp.lt.s32.totalorder %s3818_s8, %s3062_s27 }
 0x97b   : > { %v3040_v56 = vpop.eup %3039 }
 0x97c   : > { %v1534_v57 = vmul.f32 %v3040_v56, %v3036_v49 }
 0x97e   : > { %2911 = vmatprep.mubr.msk.f32.mxu1 %vm1115_vm6, %v1534_v57 }
 0x97f   : > { %2912 = vmatmul.mubr.msk.f32.vlgmr.msra.gmra.mxu1 %vm1115_vm6, %v1535_v58 }
 0x980   : > { %2915 = vmatpush3.xpose.msk.msra.mxu1 %vm914_vm4, %v1630_v54  ;;  %2918 = vmatprep.mubr.msk.f32.mxu1 %vm914_vm4, %v1624_v59 }
 0x981   : > { %2916 = vmatprep.subr.msk.mxu1 %vm914_vm4, %v1628_v60 }
 0x984   : > { %2917 = vmatpush3.xpose.msk.msra.mxu1 %vm914_vm4, %v1628_v60 }
 0x987   : > { %2919 = vmatmul.mubr.msk.f32.vlgmr.msra.gmra.mxu1 %vm914_vm4, %v1626_v61 }
 0xa3f   : > { %v2913_v0 = vpop.f32.mrf.mxu1 }
 0xa41   : > { %v1614_v1 = vpop.f32.mrf.mxu1 }
 0xa47   : > { %v2920_v2 = vpop.f32.mrf.mxu1 }
 0xa48   : > { %v1715_v3 = vmul.f32 0.33333334, %v2920_v2 }
 0xa49   : > { %v1705_v4 = vpop.f32.mrf.mxu1 }
 0xa4a   : > { %v1714_v5 = vmul.f32 0.33333334, %v1705_v4  ;;  %v1719_v6 = vsel %vm1115_vm6, %v1715_v3, -inf  ;;  %v2007_v4 = vld [vmem:[%s3942_s11 + $0x28] sm:$0x1] }
 0xa4b   : > { %1720 = vmax.xlane.f32.xlu1 %v1719_v6 }
 0xa4c   : > { %v1716_v7 = vsel %vm1115_vm6, %v1714_v5, -inf }
 0xa4d   : > { %1717 = vmax.xlane.f32.xlu0 %v1716_v7  ;;  %v2002_v7 = vld [vmem:[%s3942_s11] sm:$0xff] }
 0xa5c   : > { %1740 = vrot.lane.b32.xlu1 %v3418_v29, %s3185_s1 }
 0xa60   : > { %1827 = vrot.lane.b32.xlu1 %v3496_v33, %s3186_s5 }
 0xa64   : > { %1829 = vrot.lane.b32.xlu1 %v3494_v32, %s3186_s5  ;;  %v1857_v32 = vld [vmem:[%s3995_s7] sm:$0xff] }
 0xa68   : > { %1837 = vrot.lane.b32.xlu1 %v2913_v0, %s3187_s2 }
 0xad4   : > { %v1721_v8 = vpop.xlane.xlu1 %1720 }
 0xad5   : > { %v1723_v9 = vsub.f32 %v1715_v3, %v1721_v8  ;;  %v2003_v3 = vld [vmem:[%s3942_s11 + $0x8] sm:$0xff]  ;;  %v2006_v8 = vld [vmem:[%s3942_s11 + $0x20] sm:$0x1] }
 0xad6   : > { %v1718_v10 = vpop.xlane.xlu0 %1717  ;;  %v2011_v6 = vpack.c.bf16 %v2007_v4, %v2003_v3 }
 0xad7   : > { %v1726_v11 = vmul.f32 1.442695, %v1723_v9  ;;  %v1722_v12 = vsub.f32 %v1714_v5, %v1718_v10  ;;  %v2005_v5 = vld [vmem:[%s3942_s11 + $0x18] sm:$0xff]  ;;  %v2010_v10 = vpack.c.bf16 %v2006_v8, %v2002_v7  ;;  %v2176_v7 = vld [vmem:[%s3944_s13 + $0xc0] sm:$0xff]  ;;  %v2177_v8 = vld [vmem:[%s3944_s13 + $0xc8] sm:$0xff] }
 0xad8   : > { %v1741_v13 = vpop.permute.xlu1 %1740  ;;  %v2009_v9 = vld [vmem:[%s3942_s11 + $0x38] sm:$0x1] }
 0xad9   : > { %3041 = vpow2.f32 %v1726_v11  ;;  %v1724_v14 = vmul.f32 1.442695, %v1722_v12  ;;  %2921 = vmatprep.subr.mxu0 %v1741_v13  ;;  %v2013_v11 = vpack.c.bf16 %v2009_v9, %v2005_v5  ;;  %v2004_v12 = vld [vmem:[%s3942_s11 + $0x10] sm:$0xff]  ;;  %v2208_v9 = vld [vmem:[%s3944_s13 + $0x1c0] sm:$0xff] }
 0xada   : > { %2922 = vmatpush3.msra.mxu0 %v1741_v13  ;;  %v2008_v13 = vld [vmem:[%s3942_s11 + $0x30] sm:$0x1] }
 0xadb   : > { %3043 = vpow2.f32 %v1724_v14  ;;  %v3190_v14 = vmov 0   ;;  %v2194_v5 = vld [vmem:[%s3944_s13 + $0x150] sm:$0xff] }
 0xadc   : > { %v1828_v35 = vpop.permute.xlu1 %1827  ;;  %2086 = vmatprep.mubr.bf16.mxu1 %v3190_v14 }
 0xadd   : > { %v1849_v39 = vsel %vm914_vm4, %v3474_v63, %v1828_v35 }
 0xae0   : > { %v1830_v36 = vpop.permute.xlu1 %1829 }
 0xae1   : > { %v1850_v41 = vsel %vm914_vm4, %v3472_v62, %v1830_v36  ;;  %v2729_v36 = vld [vmem:[%s3997_s9] ss:$0 sm:$0xff]  ;;  %s3057_s9 = scalar_lea.vmem %s3818_s8, 256 }
 0xae2   : > { %p3058_p12 = scmp.ne.s32.totalorder %s3818_s8, %s3057_s9 }
 0xae4   : > { %v1838_v37 = vpop.permute.xlu1 %1837  ;;  %p3059_p13 = pnand %p3058_p12, %p3353_p5 }
 0xae5   : > { %v1853_v44 = vsel %vm1851_vm8, %v1850_v41, %v1838_v37  ;;  %v2166_v41 = vld [vmem:[%s3944_s13 + $0x70] sm:$0xff] }
 0xae6   : > { %v3042_v15 = vpop.eup %3041  ;;  %p3060_p0 = pneg %p3059_p13 }
 0xae7   : > { %v1731_v29 = vsel %vm1115_vm6, %v3042_v15, 0.0 }
 0xae8   : > { %v3044_v16 = vpop.eup %3043  ;;  %1732 = vadd.xlane.f32.xlu0 %v1731_v29  ;;  %v2012_v29 = vpack.c.bf16 %v2008_v13, %v2004_v12  ;;  %v2160_v13 = vld [vmem:[%s3944_s13 + $0x40] sm:$0xff] }
 0xae9   : > { %v1728_v17 = vsel %vm1115_vm6, %v3044_v16, 0.0 }
 0xaec   : > { %1729 = vadd.xlane.f32.xlu0 %v1728_v17 }
 0xb02   : > { %1738 = vrot.lane.b32.xlu0 %v3420_v31, %s3185_s1  ;;  %v1861_v31 = vld [vmem:[%s3995_s7 + $0x20] sm:$0xf]  ;;  %s3188_s1 = smov 27  }
 0xb06   : > { %1835 = vrot.lane.b32.xlu0 %v1614_v1, %s3187_s2 }
 0xb71   : > { %v1733_v18 = vpop.xlane.xlu0 %1732 }
 0xb72   : > { %3045 = vrcp.f32 %v1733_v18 }
 0xb75   : > { %v1730_v19 = vpop.xlane.xlu0 %1729 }
 0xb76   : > { %3047 = vrcp.f32 %v1730_v19  ;;  %v2182_v19 = vld [vmem:[%s3944_s13 + $0xf0] sm:$0xff] }
 0xb79   : > { %v1739_v20 = vpop.permute.xlu0 %1738 }
 0xb7a   : > { %2923 = vmatprep.subr.mxu0 %v1739_v20 }
 0xb7b   : > { %2924 = vmatpush3.msra.mxu0 %v1739_v20  ;;  %v2183_v20 = vld [vmem:[%s3944_s13 + $0xf8] sm:$0xff] }
 0xb7c   : > { %2928 = vmatprep.subr.msk.mxu0 %vm1875_vm7, %v1861_v31 }
 0xb7d   : > { %v1836_v38 = vpop.permute.xlu0 %1835 }
 0xb7e   : > { %v1852_v42 = vsel %vm1851_vm8, %v1849_v39, %v1836_v38 }
 0xb7f   : > { %v3046_v21 = vpop.eup %3045 }
 0xb80   : > { %v1737_v24 = vmul.f32 %v3046_v21, %v3042_v15  ;;  %v2214_v21 = vld [vmem:[%s3944_s13 + $0x1f0] sm:$0xff] }
 0xb83   : > { %v3048_v22 = vpop.eup %3047 }
 0xb84   : > { %v1736_v23 = vmul.f32 %v3048_v22, %v3044_v16  ;;  %v2231_v22 = vpack.c.bf16 %v2183_v20, %v2182_v19  ;;  %v2175_v19 = vld [vmem:[%s3944_s13 + $0xb8] sm:$0xff]  ;;  %v2206_v20 = vld [vmem:[%s3944_s13 + $0x1b0] sm:$0xff] }
 0xb86   : > { %2925 = vmatprep.mubr.msk.f32.mxu0 %vm1115_vm6, %v1736_v23  ;;  %v2215_v23 = vld [vmem:[%s3944_s13 + $0x1f8] sm:$0xff] }
 0xb87   : > { %2926 = vmatmul.mubr.msk.f32.vlgmr.msra.gmra.mxu0 %vm1115_vm6, %v1737_v24  ;;  %v2247_v24 = vpack.c.bf16 %v2215_v23, %v2214_v21  ;;  %v2207_v21 = vld [vmem:[%s3944_s13 + $0x1b8] sm:$0xff] }
 0xb88   : > { %2929 = vmatpush3.msk.msra.mxu0 %vm1875_vm7, %v1861_v31 }
 0xb89   : > { %2930 = vmatprep.subr.mxu0 %v1860_v27 }
 0xb8a   : > { %2931 = vmatpush3.msra.mxu0 %v1860_v27 }
 0xb8b   : > { %2932 = vmatprep.subr.mxu0 %v1859_v28 }
 0xb8c   : > { %2933 = vmatpush3.msra.mxu0 %v1859_v28 }
 0xb8d   : > { %2934 = vmatprep.subr.mxu0 %v1858_v30 }
 0xb8e   : > { %2935 = vmatpush3.msra.mxu0 %v1858_v30 }
 0xb8f   : > { %2936 = vmatprep.subr.mxu0 %v1857_v32 }
 0xb90   : > { %2937 = vmatpush3.msra.mxu0 %v1857_v32 }
 0xc47   : > { %v2927_v33 = vpop.f32.mrf.mxu0 }
 0xc48   : > { %1845 = vrot.lane.b32.xlu1 %v2927_v33, %s3188_s1 }
 0xc49   : > { %v1816_v34 = vpop.f32.mrf.mxu0 }
 0xc4a   : > { %1843 = vrot.lane.b32.xlu0 %v1816_v34, %s3188_s1  ;;  %s3063_s1 = scalar_lea.vmem %s3062_s27, 512 }
 0xc4b   : > { %p3065_p2 = scmp.lt.s32.totalorder %s3063_s1, %s3057_s9 }
 0xc4d   : > { %p3066_p3 = por %p3065_p2, %p3064_p1 }
 0xc4f   : > { %p3067_p4 = pnand %p3066_p3, %p3060_p0 }
 0xcba   : > { %v1846_v40 = vpop.permute.xlu1 %1845 }
 0xcbb   : > { %v1856_v46 = vsel %vm1854_vm9, %v1853_v44, %v1846_v40  ;;  %v2730_v40 = vld [vmem:[%s3941_s10] ss:$0 sm:$0xff]  ;;  %v2198_v44 = vld [vmem:[%s3944_s13 + $0x170] sm:$0xff] }
 0xcbc   : > { %v1844_v43 = vpop.permute.xlu0 %1843 }
 0xcbd   : > { %v1855_v45 = vsel %vm1854_vm9, %v1852_v42, %v1844_v43  ;;  %v2167_v42 = vld [vmem:[%s3944_s13 + $0x78] sm:$0xff] }
 0xcbe   : > { %2938 = vmatprep.mubr.msk.f32.mxu0 %vm1019_vm5, %v1855_v45  ;;  %v2199_v45 = vld [vmem:[%s3944_s13 + $0x178] sm:$0xff] }
 0xcbf   : > { %2939 = vmatmul.mubr.msk.f32.vlgmr.msra.gmra.mxu0 %vm1019_vm5, %v1856_v46  ;;  %v2180_v46 = vld [vmem:[%s3944_s13 + $0xe0] sm:$0xff] }
 0xcc0   : > { %2129 = vmatprep.mubr.bf16.mxu0 %v3190_v14  ;;  %v2161_v14 = vld [vmem:[%s3944_s13 + $0x48] sm:$0xff] }
 0xd7f   : > { %v2940_v48 = vpop.f32.mrf.mxu0 }
 0xd80   : > { %v1951_v63 = vadd.f32 %v2940_v48, %v2725_v47  ;;  %v2212_v48 = vld [vmem:[%s3944_s13 + $0x1e0] sm:$0xff] }
 0xd81   : > { %v1945_v49 = vpop.f32.mrf.mxu0 }
 0xd82   : > { %v1946_v50 = vadd.f32 %v2725_v47, %v1945_v49  ;;  %v1955_v51 = vadd.f32 %v1951_v63, %v3405_v26  ;;  %v2181_v47 = vld [vmem:[%s3944_s13 + $0xe8] sm:$0xff] }
 0xd83   : > { %v2213_v63 = vld [vmem:[%s3944_s13 + $0x1e8] sm:$0xff] }
 0xd84   : > { %v1961_v62 = vsel %vm914_vm4, %v1955_v51, 0.0  ;;  %v1954_v52 = vadd.f32 %v1946_v50, %v3403_v25  ;;  %v3189_v25 = vmov 65535  }
 0xd85   : > { %1962 = vadd.xlane.f32.xlu1 %v1961_v62  ;;  %v2040_v1 = vsel %vm1875_vm7, 4294967295, %v3189_v25  ;;  %v2239_v62 = vpack.c.bf16 %v2199_v45, %v2198_v44  ;;  %v2188_v44 = vld [vmem:[%s3944_s13 + $0x120] sm:$0xff]  ;;  %v2189_v45 = vld [vmem:[%s3944_s13 + $0x128] sm:$0xff] }
 0xd86   : > { %v1958_v53 = vsel %vm914_vm4, %v1954_v52, 0.0  ;;  %v2041_v2 = vsel %vm2039_vm10, %v2040_v1, 0  ;;  %v2162_v1 = vld [vmem:[%s3944_s13 + $0x50] sm:$0xff] }
 0xd87   : > { %1959 = vadd.xlane.f32.xlu0 %v1958_v53  ;;  %v2046_v15 = vand.u32 %v2041_v2, %v2011_v6  ;;  %v2043_v16 = vand.u32 %v2041_v2, %v2010_v10  ;;  %v2052_v17 = vand.u32 %v2041_v2, %v2013_v11  ;;  %v2049_v18 = vand.u32 %v2041_v2, %v2012_v29  ;;  %v2165_v53 = vld [vmem:[%s3944_s13 + $0x68] sm:$0xff]  ;;  %v2163_v2 = vld [vmem:[%s3944_s13 + $0x58] sm:$0xff] }
 0xd88   : > { %v2195_v6 = vld [vmem:[%s3944_s13 + $0x158] sm:$0xff]  ;;  %v2209_v10 = vld [vmem:[%s3944_s13 + $0x1c8] sm:$0xff]  ;;  %v2221_v11 = vpack.c.bf16 %v2163_v2, %v2162_v1 }
 0xd89   : > { %2068 = vmatprep.subr.bf16.mxu1 %v2046_v15  ;;  %2111 = vmatprep.subr.bf16.mxu0 %v2052_v17  ;;  %v2237_v12 = vpack.c.bf16 %v2195_v6, %v2194_v5  ;;  %v2228_v15 = vpack.c.bf16 %v2177_v8, %v2176_v7  ;;  %v2244_v29 = vpack.c.bf16 %v2209_v10, %v2208_v9  ;;  %v2193_v17 = vld [vmem:[%s3944_s13 + $0x148] sm:$0xff]  ;;  %v2016_v7 = vlaneseq }
 0xd8a   : > { %2069 = vmatpush1.bf16.msra.mxu1 %v2043_v16  ;;  %2112 = vmatpush1.bf16.msra.mxu0 %v2049_v18  ;;  %v2192_v16 = vld [vmem:[%s3944_s13 + $0x140] sm:$0xff]  ;;  %v2174_v18 = vld [vmem:[%s3944_s13 + $0xb0] sm:$0xff]  ;;  %v2153_v1 = vld [vmem:[%s3944_s13 + $0x8] sm:$0xff] }
 0xd8b   : > { %2802 = vmatprep.subr.bf16.mxu1 %v2231_v22  ;;  %2824 = vmatprep.subr.bf16.mxu0 %v2247_v24  ;;  %v2220_v22 = vpack.c.bf16 %v2161_v14, %v2160_v13  ;;  %v2236_v23 = vpack.c.bf16 %v2193_v17, %v2192_v16  ;;  %v2158_v24 = vld [vmem:[%s3944_s13 + $0x30] sm:$0xff]  ;;  %v2185_v5 = vld [vmem:[%s3944_s13 + $0x108] sm:$0xff]  ;;  %v2017_v8 = vshrl.u32 %v2016_v7, 7  ;;  %v2014_v13 = vld [vmem:[%s3943_s12] sm:$0xf] }
 0xd8d   : > { %v2022_v9 = vsub.s32 1, %v2017_v8  ;;  %v2030_v10 = vsub.s32 3, %v2017_v8 }
 0xd8f   : > { %v2031_v16 = vrot.slane %v2014_v13, %v2030_v10 }
 0xe0e   : > { %v1963_v54 = vpop.xlane.xlu1 %1962 }
 0xe0f   : > { %v1966_v55 = vmul.f32 0.11111111, %v1963_v54 }
 0xe10   : > { %v1960_v56 = vpop.xlane.xlu0 %1959 }
 0xe11   : > { %v1965_v57 = vmul.f32 0.11111111, %v1960_v56  ;;  %v1968_v58 = vsub.f32 %v1955_v51, %v1966_v55  ;;  %v2223_v51 = vpack.c.bf16 %v2167_v42, %v2166_v41  ;;  %v2230_v55 = vpack.c.bf16 %v2181_v47, %v2180_v46  ;;  %v2157_v41 = vld [vmem:[%s3944_s13 + $0x28] sm:$0xff]  ;;  %v2170_v47 = vld [vmem:[%s3944_s13 + $0x90] sm:$0xff] }
 0xe12   : > { %v2246_v56 = vpack.c.bf16 %v2213_v63, %v2212_v48  ;;  %v2234_v46 = vpack.c.bf16 %v2189_v45, %v2188_v44  ;;  %v2171_v48 = vld [vmem:[%s3944_s13 + $0x98] sm:$0xff]  ;;  %v2202_v63 = vld [vmem:[%s3944_s13 + $0x190] sm:$0xff] }
 0xe13   : > { %v1967_v59 = vsub.f32 %v1954_v52, %v1965_v57  ;;  %v1970_v0 = vmul.f32 %v1968_v58, %v1968_v58  ;;  %v2164_v52 = vld [vmem:[%s3944_s13 + $0x60] sm:$0xff] }
 0xe14   : > { %v2196_v57 = vld [vmem:[%s3944_s13 + $0x160] sm:$0xff] }
 0xe15   : > { %v1969_v60 = vmul.f32 %v1967_v59, %v1967_v59  ;;  %v1974_v26 = vsel %vm914_vm4, %v1970_v0, 0.0  ;;  %v2211_v0 = vld [vmem:[%s3944_s13 + $0x1d8] sm:$0xff] }
 0xe17   : > { %v1971_v61 = vsel %vm914_vm4, %v1969_v60, 0.0  ;;  %v2179_v60 = vld [vmem:[%s3944_s13 + $0xd8] sm:$0xff] }
 0xe18   : > { %1972 = vadd.xlane.f32.xlu0 %v1971_v61  ;;  %v2210_v61 = vld [vmem:[%s3944_s13 + $0x1d0] sm:$0xff] }
 0xe19   : > { %v2245_v4 = vpack.c.bf16 %v2211_v0, %v2210_v61  ;;  %v2200_v61 = vld [vmem:[%s3944_s13 + $0x180] sm:$0xff] }
 0xe1c   : > { %1975 = vadd.xlane.f32.xlu0 %v1974_v26  ;;  %v2222_v26 = vpack.c.bf16 %v2165_v53, %v2164_v52  ;;  %v2154_v52 = vld [vmem:[%s3944_s13 + $0x10] sm:$0xff]  ;;  %v2155_v53 = vld [vmem:[%s3944_s13 + $0x18] sm:$0xff] }
 0xea1   : > { %v1973_v31 = vpop.xlane.xlu0 %1972 }
 0xea2   : > { %v1977_v27 = vmul.f32 0.11111111, %v1973_v31  ;;  %v2227_v31 = vpack.c.bf16 %v2175_v19, %v2174_v18 }
 0xea4   : > { %v1979_v28 = vadd.f32 1e-05, %v1977_v27  ;;  %v2243_v27 = vpack.c.bf16 %v2207_v21, %v2206_v20 }
 0xea5   : > { %v1976_v30 = vpop.xlane.xlu0 %1975 }
 0xea6   : > { %3049 = vrsqrt.f32 %v1979_v28  ;;  %v1978_v32 = vmul.f32 0.11111111, %v1976_v30  ;;  %v2159_v28 = vld [vmem:[%s3944_s13 + $0x38] sm:$0xff]  ;;  %v2190_v30 = vld [vmem:[%s3944_s13 + $0x130] sm:$0xff] }
 0xea8   : > { %v1980_v33 = vadd.f32 1e-05, %v1978_v32  ;;  %v2191_v32 = vld [vmem:[%s3944_s13 + $0x138] sm:$0xff] }
 0xeaa   : > { %3051 = vrsqrt.f32 %v1980_v33  ;;  %v2219_v33 = vpack.c.bf16 %v2159_v28, %v2158_v24 }
 0xeb3   : > { %v3050_v34 = vpop.eup %3049 }
 0xeb4   : > { %v1983_v35 = vmul.f32 %v3050_v34, %v1967_v59  ;;  %v2178_v59 = vld [vmem:[%s3944_s13 + $0xd0] sm:$0xff]  ;;  %v2235_v34 = vpack.c.bf16 %v2191_v32, %v2190_v30 }
 0xeb5   : > { %v2229_v3 = vpack.c.bf16 %v2179_v60, %v2178_v59  ;;  %v2168_v59 = vld [vmem:[%s3944_s13 + $0x80] sm:$0xff]  ;;  %v2169_v60 = vld [vmem:[%s3944_s13 + $0x88] sm:$0xff] }
 0xeb6   : > { %v1991_v39 = vmul.f32 %v2729_v36, %v1983_v35  ;;  %v2172_v35 = vld [vmem:[%s3944_s13 + $0xa0] sm:$0xff]  ;;  %v2224_v0 = vpack.c.bf16 %v2169_v60, %v2168_v59 }
 0xeb7   : > { %v3052_v37 = vpop.eup %3051 }
 0xeb8   : > { %v1984_v38 = vmul.f32 %v3052_v37, %v1968_v58  ;;  %v3625_v49 = vadd.f32 %v2730_v40, %v1991_v39  ;;  %v2197_v58 = vld [vmem:[%s3944_s13 + $0x168] sm:$0xff]  ;;  %v2204_v37 = vld [vmem:[%s3944_s13 + $0x1a0] sm:$0xff] }
 0xeb9   : > { %v2238_v25 = vpack.c.bf16 %v2197_v58, %v2196_v57  ;;  %v2205_v39 = vld [vmem:[%s3944_s13 + $0x1a8] sm:$0xff]  ;;  %v2187_v57 = vld [vmem:[%s3944_s13 + $0x118] sm:$0xff] }
 0xeba   : > { %v1992_v43 = vmul.f32 %v2729_v36, %v1984_v38  ;;  %v2173_v36 = vld [vmem:[%s3944_s13 + $0xa8] sm:$0xff]  ;;  %v2242_v42 = vpack.c.bf16 %v2205_v39, %v2204_v37 }
 0xebb   : > { %v2226_v38 = vpack.c.bf16 %v2173_v36, %v2172_v35 }
 0xebc   : > { %v3627_v50 = vadd.f32 %v2730_v40, %v1992_v43  ;;  %v2156_v40 = vld [vmem:[%s3944_s13 + $0x20] sm:$0xff] }
 0xebd   : > { %v2218_v43 = vpack.c.bf16 %v2157_v41, %v2156_v40 }
 0xebe   : > { %v2001_v54 = vpack.c.bf16 %v3627_v50, %v3625_v49 }
 0xec0   : > { %2731 = vmatmul.mubr.msk.bf16.vlgmr.msra.gmra.mxu1 %vm914_vm4, %v2001_v54  ;;  %2732 = vmatmul.mubr.msk.bf16.vlgmr.msra.gmra.mxu0 %vm914_vm4, %v2001_v54 }
 0xec1   : > { %2803 = vmatpush3.bf16.msra.mxu1 %v2223_v51  ;;  %2825 = vmatpush3.bf16.msra.mxu0 %v2239_v62  ;;  %v2225_v51 = vpack.c.bf16 %v2171_v48, %v2170_v47  ;;  %v2203_v62 = vld [vmem:[%s3944_s13 + $0x198] sm:$0xff] }
 0xec2   : > { %2804 = vmatprep.subr.bf16.mxu1 %v2230_v55  ;;  %2826 = vmatprep.subr.bf16.mxu0 %v2246_v56  ;;  %v2241_v54 = vpack.c.bf16 %v2203_v62, %v2202_v63  ;;  %v2217_v55 = vpack.c.bf16 %v2155_v53, %v2154_v52  ;;  %v2186_v56 = vld [vmem:[%s3944_s13 + $0x110] sm:$0xff] }
 0xec3   : > { %v2233_v58 = vpack.c.bf16 %v2187_v57, %v2186_v56 }
 0xec5   : > { %2805 = vmatpush3.bf16.msra.mxu1 %v2222_v26  ;;  %2827 = vmatpush3.bf16.msra.mxu0 %v2238_v25  ;;  %v2201_v26 = vld [vmem:[%s3944_s13 + $0x188] sm:$0xff]  ;;  %v2152_v25 = vld [vmem:[%s3944_s13] sm:$0xff] }
 0xec6   : > { %2806 = vmatprep.subr.bf16.mxu1 %v2229_v3  ;;  %2828 = vmatprep.subr.bf16.mxu0 %v2245_v4  ;;  %v2240_v2 = vpack.c.bf16 %v2201_v26, %v2200_v61  ;;  %v2216_v3 = vpack.c.bf16 %v2153_v1, %v2152_v25  ;;  %v2184_v4 = vld [vmem:[%s3944_s13 + $0x100] sm:$0xff] }
 0xec7   : > { %v2232_v6 = vpack.c.bf16 %v2185_v5, %v2184_v4 }
 0xec9   : > { %2807 = vmatpush3.bf16.msra.mxu1 %v2221_v11  ;;  %2829 = vmatpush3.bf16.msra.mxu0 %v2237_v12  ;;  %v2018_v11 = vsub.s32 0, %v2017_v8  ;;  %v2026_v12 = vsub.s32 2, %v2017_v8 }
 0xeca   : > { %2808 = vmatprep.subr.bf16.mxu1 %v2228_v15  ;;  %2830 = vmatprep.subr.bf16.mxu0 %v2244_v29  ;;  %v2023_v29 = vrot.slane %v2014_v13, %v2022_v9 }
 0xecb   : > { %v2019_v17 = vrot.slane %v2014_v13, %v2018_v11  ;;  %v2027_v18 = vrot.slane %v2014_v13, %v2026_v12 }
 0xecd   : > { %2809 = vmatpush3.bf16.msra.mxu1 %v2220_v22  ;;  %2831 = vmatpush3.bf16.msra.mxu0 %v2236_v23 }
 0xece   : > { %2810 = vmatprep.subr.bf16.mxu1 %v2227_v31  ;;  %2832 = vmatprep.subr.bf16.mxu0 %v2243_v27 }
 0xed1   : > { %2811 = vmatpush3.bf16.msra.mxu1 %v2219_v33  ;;  %2833 = vmatpush3.bf16.msra.mxu0 %v2235_v34 }
 0xed2   : > { %2812 = vmatprep.subr.bf16.mxu1 %v2226_v38  ;;  %2834 = vmatprep.subr.bf16.mxu0 %v2242_v42 }
 0xed5   : > { %2813 = vmatpush3.bf16.msra.mxu1 %v2218_v43  ;;  %2835 = vmatpush3.bf16.msra.mxu0 %v2234_v46 }
 0xed6   : > { %2814 = vmatprep.subr.bf16.mxu1 %v2225_v51  ;;  %2836 = vmatprep.subr.bf16.mxu0 %v2241_v54  ;;  %v2733_v51 = vld [vmem:[%s3945_s14] ss:$0 sm:$0xff] }
 0xed9   : > { %2815 = vmatpush3.bf16.msra.mxu1 %v2217_v55  ;;  %2837 = vmatpush3.bf16.msra.mxu0 %v2233_v58 }
 0xeda   : > { %2816 = vmatprep.subr.bf16.mxu1 %v2224_v0  ;;  %2838 = vmatprep.subr.bf16.mxu0 %v2240_v2 }
 0xedd   : > { %2817 = vmatpush3.bf16.msra.mxu1 %v2216_v3  ;;  %2839 = vmatpush3.bf16.msra.mxu0 %v2232_v6 }
 0xf80   : > { %v2088_v14 = vpop.f32.mrf.mxu1  ;;  %v2131_v15 = vpop.f32.mrf.mxu0 }
 0xf81   : > { %v2089_v28 = vadd.f32 %v2088_v14, %v2019_v17  ;;  %v2132_v30 = vadd.f32 %v2131_v15, %v2027_v18  ;;  %v3191_v14 = vmov 0.0   ;;  %v2394_v15 = vld [vmem:[%s3948_s17] sm:$0xff] }
 0xf82   : > { %v2090_v19 = vpop.f32.mrf.mxu1  ;;  %v2133_v20 = vpop.f32.mrf.mxu0  ;;  %2941 = vmatprep.subr.mxu1 %v3191_v14 }
 0xf83   : > { %v2091_v23 = vadd.f32 %v2090_v19, %v2023_v29  ;;  %v2134_v24 = vadd.f32 %v2133_v20, %v2031_v16  ;;  %v2140_v42 = vmax.f32 %v2089_v28, 0.0  ;;  %v2142_v43 = vmax.f32 %v2132_v30, 0.0 }
 0xf84   : > { %v2092_v21 = vpop.f32.mrf.mxu1  ;;  %v2135_v22 = vpop.f32.mrf.mxu0 }
 0xf85   : > { %v2093_v31 = vadd.f32 %v2092_v21, %v2019_v17  ;;  %v2136_v27 = vadd.f32 %v2135_v22, %v2027_v18  ;;  %v2141_v38 = vmax.f32 %v2091_v23, 0.0  ;;  %v2143_v39 = vmax.f32 %v2134_v24, 0.0  ;;  %v2734_v22 = vld [vmem:[%s3946_s15] ss:$0 sm:$0xff] }
 0xf86   : > { %v2094_v32 = vpop.f32.mrf.mxu1  ;;  %v2137_v33 = vpop.f32.mrf.mxu0 }
 0xf87   : > { %v2095_v34 = vadd.f32 %v2094_v32, %v2023_v29  ;;  %v2138_v35 = vadd.f32 %v2137_v33, %v2031_v16  ;;  %v2144_v36 = vmax.f32 %v2093_v31, 0.0  ;;  %v2146_v37 = vmax.f32 %v2136_v27, 0.0  ;;  %v2735_v27 = vld [vmem:[%s3947_s16] ss:$0 sm:$0xff] }
 0xf89   : > { %v2145_v40 = vmax.f32 %v2095_v34, 0.0  ;;  %v2147_v41 = vmax.f32 %v2138_v35, 0.0  ;;  %v2148_v46 = vpack.c.bf16 %v2144_v36, %v2140_v42  ;;  %v2150_v47 = vpack.c.bf16 %v2146_v37, %v2142_v43 }
 0xf8b   : > { %v2149_v44 = vpack.c.bf16 %v2145_v40, %v2141_v38  ;;  %v2151_v45 = vpack.c.bf16 %v2147_v41, %v2143_v39 }
 0xf8d   : > { %2287 = vmatprep.mubr.bf16.mxu1 %v2149_v44  ;;  %2328 = vmatprep.mubr.bf16.mxu0 %v2151_v45 }
 0xf8e   : > { %2288 = vmatmul.mubr.bf16.vlgmr.msra.gmra.mxu1 %v2148_v46  ;;  %2329 = vmatmul.mubr.bf16.vlgmr.msra.gmra.mxu0 %v2150_v47 }
 0xf8f   : > { %2945 = vmatprep.mubr.msk.f32.mxu1 %vm3192_vm11, %v3191_v14 }
0x104e   : > { %v2818_v48 = vpop.f32.mrf.mxu1  ;;  %v2840_v63 = vpop.f32.mrf.mxu0 }
0x1050   : > { %v2819_v62 = vpop.f32.mrf.mxu1  ;;  %v2841_v52 = vpop.f32.mrf.mxu0 }
0x1051   : > { %v2820_v53 = vadd.f32 %v2819_v62, %v2818_v48  ;;  %v2842_v57 = vadd.f32 %v2841_v52, %v2840_v63 }
0x1052   : > { %v2821_v54 = vpop.f32.mrf.mxu1  ;;  %v2843_v55 = vpop.f32.mrf.mxu0 }
0x1053   : > { %v2290_v56 = vadd.f32 %v2820_v53, %v2733_v51 }
0x1054   : > { %v2822_v58 = vpop.f32.mrf.mxu1  ;;  %v2844_v59 = vpop.f32.mrf.mxu0 }
0x1055   : > { %v2331_v60 = vadd.f32 %v2842_v57, %v2290_v56  ;;  %v2823_v61 = vadd.f32 %v2822_v58, %v2821_v54  ;;  %v2845_v26 = vadd.f32 %v2844_v59, %v2843_v55 }
0x1057   : > { %v2293_v0 = vadd.f32 %v2823_v61, %v2733_v51  ;;  %v2337_v25 = vadd.f32 %v2331_v60, %v3625_v49 }
0x1059   : > { %v2334_v1 = vadd.f32 %v2845_v26, %v2293_v0  ;;  %v2341_v2 = vsel %vm914_vm4, %v2337_v25, 0.0 }
0x105a   : > { %2342 = vadd.xlane.f32.xlu1 %v2341_v2 }
0x105b   : > { %v2338_v3 = vadd.f32 %v2334_v1, %v3627_v50  ;;  %v2395_v50 = vld [vmem:[%s3948_s17 + $0x8] sm:$0x1] }
0x105c   : > { %2942 = vmatpush3.msk.msra.mxu1 %vm932_vm3, %v2395_v50 }
0x105d   : > { %v2344_v4 = vsel %vm914_vm4, %v2338_v3, 0.0  ;;  %2943 = vmatprep.subr.mxu1 %v3191_v14 }
0x105e   : > { %2345 = vadd.xlane.f32.xlu0 %v2344_v4  ;;  %2944 = vmatpush3.msra.mxu1 %v2394_v15 }
0x10e3   : > { %v2343_v5 = vpop.xlane.xlu1 %2342 }
0x10e4   : > { %v2347_v6 = vmul.f32 0.11111111, %v2343_v5 }
0x10e6   : > { %v2349_v7 = vsub.f32 %v2337_v25, %v2347_v6 }
0x10e7   : > { %v2346_v8 = vpop.xlane.xlu0 %2345 }
0x10e8   : > { %v2348_v9 = vmul.f32 0.11111111, %v2346_v8  ;;  %v2351_v10 = vmul.f32 %v2349_v7, %v2349_v7 }
0x10ea   : > { %v2350_v11 = vsub.f32 %v2338_v3, %v2348_v9  ;;  %v2353_v12 = vsel %vm914_vm4, %v2351_v10, 0.0 }
0x10eb   : > { %2354 = vadd.xlane.f32.xlu1 %v2353_v12 }
0x10ec   : > { %v2352_v49 = vmul.f32 %v2350_v11, %v2350_v11 }
0x10ee   : > { %v2356_v13 = vsel %vm914_vm4, %v2352_v49, 0.0 }
0x10ef   : > { %2357 = vadd.xlane.f32.xlu0 %v2356_v13 }
0x1174   : > { %v2355_v29 = vpop.xlane.xlu1 %2354 }
0x1175   : > { %v2359_v16 = vmul.f32 0.11111111, %v2355_v29 }
0x1177   : > { %v2361_v17 = vadd.f32 1e-05, %v2359_v16 }
0x1178   : > { %v2358_v18 = vpop.xlane.xlu0 %2357 }
0x1179   : > { %3053 = vrsqrt.f32 %v2361_v17  ;;  %v2360_v19 = vmul.f32 0.11111111, %v2358_v18 }
0x117b   : > { %v2362_v20 = vadd.f32 1e-05, %v2360_v19 }
0x117d   : > { %3055 = vrsqrt.f32 %v2362_v20 }
0x1186   : > { %v3054_v21 = vpop.eup %3053 }
0x1187   : > { %v2365_v23 = vmul.f32 %v3054_v21, %v2349_v7 }
0x1189   : > { %v2373_v24 = vmul.f32 %v2734_v22, %v2365_v23 }
0x118a   : > { %v3056_v31 = vpop.eup %3055 }
0x118b   : > { %v2366_v28 = vmul.f32 %v3056_v31, %v2350_v11  ;;  %v2381_v30 = vadd.f32 %v2735_v27, %v2373_v24 }
0x118d   : > { %v2374_v32 = vmul.f32 %v2734_v22, %v2366_v28  ;;  %v2383_v34 = vsel %vm914_vm4, %v2381_v30, 0.0 }
0x118f   : > { %v2382_v33 = vadd.f32 %v2735_v27, %v2374_v32 }
0x1191   : > { %v2384_v35 = vsel %vm914_vm4, %v2382_v33, 0.0 }
0x1192   : > { %v2385_v36 = vadd.f32 %v2384_v35, %v2383_v34 }
0x1194   : > { %v2386_v37 = vrot.slane %v2385_v36, 4 }
0x1196   : > { %v2387_v38 = vadd.f32 %v2386_v37, %v2385_v36 }
0x1198   : > { %v2388_v39 = vrot.slane %v2387_v38, 2 }
0x119a   : > { %v2389_v40 = vadd.f32 %v2388_v39, %v2387_v38 }
0x119c   : > { %v2390_v41 = vrot.slane %v2389_v40, 1 }
0x119e   : > { %v2391_v42 = vadd.f32 %v2390_v41, %v2389_v40 }
0x11a0   : > { %v2393_v43 = vmul.f32 0.0625, %v2391_v42 }
0x11a2   : > { %2946 = vmatmul.mubr.msk.f32.vlgmr.msra.gmra.mxu1 %vm914_vm4, %v2393_v43 }
0x11a3   : > { %3070 = shalt.err (!%p3067_p4)
}
0x11a4   : > { %s3071_s7 = scalar_lea.hbm %s3828_s29, 256  ;;  %s3075_s2 = scalar_lea.hbm %s3951_s20, 512 }
0x11a5   : > { %p3072_p7 = scmp.ne.s32.totalorder %s3828_s29, %s3071_s7  ;;  %p3076_p10 = scmp.lt.s32.totalorder %s3828_s29, %s3951_s20 }
0x11a6   : > { %p3077_p11 = scmp.lt.s32.totalorder %s3075_s2, %s3071_s7 }
0x11a7   : > { %p3073_p8 = pnand %p3072_p7, %p3353_p5 }
0x11a8   : > { %p3078_p12 = por %p3077_p11, %p3076_p10 }
0x11a9   : > { %p3074_p9 = pneg %p3073_p8 }
0x11ab   : > { %p3079_p13 = pnand %p3078_p12, %p3074_p9 }
0x11ad   : > { %3082 = shalt.err (!%p3079_p13)
}
0x11ae   : > { %s3967_s9 = smov 128   ;;  %s3195_s27 = smov 8  }
0x11af   : > { %2949 = dma.vmem_to_hbm [thread:$0]  (%p3353_p5), %s3818_s8, 256, %s3828_s29, %s3830_s25, %s3967_s9, %s3967_s9, %s3195_s27  }
0x11b0   : > { %s3998_s22 = sshll.u32 %s3334_s4, 8  ;;  %s3083_s5 = scalar_lea.vmem %s3858_s28, 256 }
0x11b1   : > { %s2531_s23 = scalar_lea.hbm %s3952_s21, %s3998_s22  ;;  %p3084_p0 = scmp.ne.s32.totalorder %s3858_s28, %s3083_s5 }
0x11b2   : > { %s3196_s2 = smov [#allocation6]  }
0x11b3   : > { %p3085_p1 = pnand %p3084_p0, %p3353_p5  ;;  %s3087_s0 = sshll.u32 %s3196_s2, 4  ;;  %s3088_s0 = int_to_ptr.vmem [resolvable:$false] %s3087_s0 }
0x11b4   : > { %s3089_s8 = scalar_lea.vmem %s3088_s0, 512  ;;  %p3090_p3 = scmp.lt.s32.totalorder %s3858_s28, %s3088_s0 }
0x11b5   : > { %p3086_p2 = pneg %p3085_p1  ;;  %p3091_p4 = scmp.lt.s32.totalorder %s3089_s8, %s3083_s5 }
0x11b7   : > { %p3092_p7 = por %p3091_p4, %p3090_p3 }
0x11b9   : > { %p3093_p8 = pnand %p3092_p7, %p3086_p2 }
0x11bb   : > { %3096 = shalt.err (!%p3093_p8)
}
0x11bc   : > { %s3097_s24 = scalar_lea.hbm %s2531_s23, 256  ;;  %s3101_s1 = scalar_lea.hbm %s3952_s21, 512 }
0x11bd   : > { %p3098_p9 = scmp.ne.s32.totalorder %s2531_s23, %s3097_s24  ;;  %p3102_p12 = scmp.lt.s32.totalorder %s2531_s23, %s3952_s21 }
0x11be   : > { %p3103_p13 = scmp.lt.s32.totalorder %s3101_s1, %s3097_s24 }
0x11bf   : > { %p3099_p10 = pnand %p3098_p9, %p3353_p5 }
0x11c0   : > { %p3104_p0 = por %p3103_p13, %p3102_p12 }
0x11c1   : > { %p3100_p11 = pneg %p3099_p10 }
0x11c3   : > { %p3105_p1 = pnand %p3104_p0, %p3100_p11 }
0x11c5   : > { %3108 = shalt.err (!%p3105_p1)
}
0x11c6   : > { %s3999_s5 = smov 128   ;;  %v2396_v44 = vld [vmem:[%s3949_s18] sm:$0x1]  ;;  %s2740_s9 = sshll.u32 %s3334_s4, 4  ;;  %vm2473_vm12 = vcmask 253952  }
0x11c7   : > { %2950 = dma.vmem_to_hbm [thread:$0]  (%p3353_p5), %s3858_s28, 256, %s2531_s23, %s3830_s25, %s3999_s5, %s3999_s5, %s3195_s27  }
0x11c8   : > { %s679_s8 = scalar_lea.vmem [#allocation2], %s3427_s26  ;;  %s3893_s1 = scalar_lea.hbm %s3950_s19, %s2740_s9 }
0x11c9   : > { %s2503_s24 = sshll.u32 %s679_s8, 4  ;;  %s2476_s7 = scalar_lea.sflag [#allocation3], %s3427_s26  ;;  %s2504_s24 = int_to_ptr.vmem [resolvable:$true] %s2503_s24 }
0x11ca   : > { %s3109_s28 = scalar_lea.vmem %s2504_s24, 16  ;;  %s3197_s4 = smov [#allocation2]  }
0x11cb   : > { %p3110_p2 = scmp.ne.s32.totalorder %s2504_s24, %s3109_s28  ;;  %s3113_s25 = sshll.u32 %s3197_s4, 4  ;;  %s3114_s25 = int_to_ptr.vmem [resolvable:$false] %s3113_s25 }
0x11cc   : > { %s3115_s27 = scalar_lea.vmem %s3114_s25, 32  ;;  %p3116_p7 = scmp.lt.s32.totalorder %s2504_s24, %s3114_s25 }
0x11cd   : > { %p3111_p3 = pnand %p3110_p2, %p3353_p5  ;;  %p3117_p8 = scmp.lt.s32.totalorder %s3115_s27, %s3109_s28 }
0x11cf   : > { %p3112_p4 = pneg %p3111_p3  ;;  %p3118_p9 = por %p3117_p8, %p3116_p7 }
0x11d1   : > { %p3119_p10 = pnand %p3118_p9, %p3112_p4 }
0x1262   : > { %v2469_v45 = vpop.f32.mrf.mxu1 }
0x1263   : > { %v2470_v46 = vadd.f32 %v2469_v45, %v2396_v44 }
0x1264   : > { %v2947_v47 = vpop.f32.mrf.mxu1 }
0x1265   : > { %2474 = vst.msk [vmem:[%s679_s8] sm:$0x1] %vm2473_vm12, %v2470_v46 }
0x1266   : > { %3122 = shalt.err (!%p3119_p10)
}
0x1267   : > { %s3123_s23 = scalar_lea.hbm %s3893_s1, 16  ;;  %s3127_s2 = scalar_lea.hbm %s3950_s19, 32 }
0x1268   : > { %p3124_p11 = scmp.ne.s32.totalorder %s3893_s1, %s3123_s23  ;;  %p3128_p0 = scmp.lt.s32.totalorder %s3893_s1, %s3950_s19 }
0x1269   : > { %p3129_p1 = scmp.lt.s32.totalorder %s3127_s2, %s3123_s23 }
0x126a   : > { %p3125_p12 = pnand %p3124_p11, %p3353_p5 }
0x126b   : > { %p3130_p2 = por %p3129_p1, %p3128_p0 }
0x126c   : > { %p3126_p13 = pneg %p3125_p12 }
0x126e   : > { %p3131_p3 = pnand %p3130_p2, %p3126_p13 }
0x1270   : > { %3134 = shalt.err (!%p3131_p3)
}
0x1271   : > { %2948 = dma.vmem_to_hbm [thread:$0]  (%p3353_p5), %s2504_s24, 16, %s3893_s1, %s2476_s7  }
0x1272 PF: > { %p2964_p4 = scmp.ge.s32.totalorder %s3173_s30, 2  ;;  %s2551_s29 = sand.u32 1, %s3161_s3  }
0x1273   : > { %s2552_s22 = scalar_lea.sflag [#allocation3], %s2551_s29 }
0x1274   : > { %p2955_p7 = pnand %p2964_p4, %p3357_p6 }
0x1276   : > { %p2956_p8 = pneg %p2955_p7 }
0x1278   : > { %3152 = dma.done.wait (%p2956_p8), %s2552_s22, 16  }
0x1279   : > { %3154 = vsyncadd (%p2956_p8), %s2552_s22, 4294967280  ;;  %s4001_s28 = sadd.s32 4294967294, %s3173_s30  }
0x127a   : > { %s2559_s4 = sand.u32 1, %s4001_s28  }
0x127b   : > { %s2560_s25 = scalar_lea.sflag [#allocation5], %s2559_s4 }
0x127c   : > { %3156 = dma.done.wait (%p2956_p8), %s2560_s25, 512  }
0x127d   : > { %3158 = vsyncadd (%p2956_p8), %s2560_s25, 4294966784  ;;  %s4002_s30 = sld [smem:[#allocation11_spill]] }
0x127e   : > { %s4003_s3 = sld [smem:[#allocation9_spill]] }
0x127f   : > { %s4004_s28 = sld [smem:[#allocation10_spill]] }
0x1280   : > { %s4005_s29 = sld [smem:[#allocation12_spill]] }
0x1283   : > { %p36_p5 = scmp.ge.s32.totalorder %s4002_s30, 4  }
0x1285   :  { %38 = sbr.rel (!%p36_p5) target bundleno = 17 (0x11), region = 175 }
0x128a   :  { %2582 = vsyncpa [#allocation3], 1 }
0x128b   :  { %2584 = vsyncpa [#allocation3 + $0x1], 1 }
0x128c   :  { %2585 = vsyncpa [#allocation5], 1 }
0x128d   :  { %2587 = vsyncpa [#allocation5 + $0x1], 1 }

</bundles_post_ra>
